<compile_context>
chip_gen: v6e
topology: v6e:2x2x1
jax: 0.10.0
libtpu: 0.0.40
codegen_flags: <defaults>
</compile_context>

<pallas_src>
import functools

import jax
import jax.numpy as jnp
from jax.experimental import pallas as pl
from jax.experimental.pallas import tpu as pltpu

_HP = 128      # lane-padded per-slot head segment
_META_W = 128  # lane-padded meta segment (mask | shifted mask | score | period | one)


def _round_up(x, m):
  return ((x + m - 1) // m) * m


def _memory_bank_kernel(data_ref, wbig_ref, wmid_ref, wsmall_ref, bias_ref, out_ref,
                        *, dim, hid, heads, mem_len, save_thresh,
                        save_period_const, training, eps):
  # TODO(synk): the PyTorch zero-length early returns (len(track_instances)==0,
  # len(embed)==0, len(saved_embed)==0) are dynamic-shape guards; here N is fixed and
  # the masked-select formulation covers the non-empty case exactly.
  D, HID, H, L = dim, hid, heads, mem_len
  LD = L * D
  HP, LHP = _HP, L * _HP
  XP = _round_up(D, 128)
  meta = LD + XP                     # start of the meta segment (128-aligned)
  pdw = LD + XP + _META_W            # fused-projection input width (128-aligned)

  data = data_ref[...]
  mem       = data[:, 0:LD]                                # current memory bank
  x         = data[:, LD:LD + D]                           # output_embedding
  mask_f    = data[:, meta:meta + L]                       # key padding mask (1 = padded)
  mask_sh_f = data[:, meta + L:meta + 2 * L]               # mask shifted one slot
  score     = data[:, meta + 2 * L:meta + 2 * L + 1]
  sp        = data[:, meta + 2 * L + 1:meta + 2 * L + 2]
  mem_shift = data[:, pdw:pdw + LD]                        # bank shifted one slot (host-prepared)

  # ---- fused Q/K/V projection + key-padding expansion (bias folded via the
  #      constant-1 lane of the meta segment) ----
  proj = jnp.dot(data[:, 0:pdw], wbig_ref[...], preferred_element_type=jnp.float32)
  k_all = proj[:, 0:LD]
  q_rep = proj[:, LD:2 * LD]          # query, pre-scaled, replicated per slot
  v_all = proj[:, 2 * LD:3 * LD]
  s     = proj[:, 3 * LD:]            # -1e9 * mask expanded over (slot, padded-head) lanes

  c1, c2, c3, c4 = LHP, 2 * LHP, 2 * LHP + LD, 2 * LHP + 2 * LD
  hb  = wmid_ref[0:LD, 0:c1]          # (LD, LHP)  dim -> head reduction (block diag)
  rep = wmid_ref[0:HP, c1:c2]         # (HP, LHP)  head -> per-slot replication
  hbt = wmid_ref[0:LHP, c2:c3]        # (LHP, LD)  head -> dim expansion (block diag)
  eld = wmid_ref[0:HP, c3:c4]         # (HP, LD)   head -> dim expansion (all slots)
  wot = wmid_ref[0:LD, c4:c4 + D]     # (LD, D)    out-proj, vertically tiled over slots

  # per-(slot, head) attention logits; every 128-lane segment is one memory slot
  s = s + jnp.dot(q_rep * k_all, hb, preferred_element_type=jnp.float32)

  # softmax over the L memory slots; all slices are full 128-lane aligned vregs
  m = s[:, 0:HP]
  for l in range(1, L):
    m = jnp.maximum(m, s[:, l * HP:(l + 1) * HP])
  p = jnp.exp(s - jnp.dot(m, rep, preferred_element_type=jnp.float32))
  denom = p[:, 0:HP]
  for l in range(1, L):
    denom = denom + p[:, l * HP:(l + 1) * HP]
  inv = pl.reciprocal(denom, approx=False)

  ctx = (jnp.dot(p, hbt, preferred_element_type=jnp.float32) * v_all
         * jnp.dot(inv, eld, preferred_element_type=jnp.float32))
  bo = bias_ref[0:1, :D]
  embed2 = jnp.dot(ctx, wot, preferred_element_type=jnp.float32) + bo

  def layer_norm(v, g, b):
    mu = jnp.mean(v, axis=-1, keepdims=True)
    c = v - mu
    var = jnp.mean(c * c, axis=-1, keepdims=True)
    return c * jax.lax.rsqrt(var + eps) * g + b

  b1 = bias_ref[1:2, :HID]
  b2 = bias_ref[2:3, :D]
  g1, be1 = bias_ref[3:4, :D], bias_ref[4:5, :D]
  g2, be2 = bias_ref[5:6, :D], bias_ref[6:7, :D]

  e1 = layer_norm(x + embed2, g1, be1)
  w1 = wsmall_ref[0][:D, :HID]
  w2 = wsmall_ref[1][:HID, :D]
  hh = jnp.maximum(jnp.dot(e1, w1, preferred_element_type=jnp.float32) + b1, 0.0)
  ff = jnp.dot(hh, w2, preferred_element_type=jnp.float32) + b2
  e2 = layer_norm(e1 + ff, g2, be2)

  valid = mask_f[:, L - 1:L] == 0.0                        # last memory slot not padded
  new_x = jnp.where(valid, e2, x)

  # ---- MemoryBank.update ----
  if training:
    saved = score > 0.0
    new_sp = sp
  else:
    saved = jnp.logical_and(sp == 0.0, score > save_thresh)
    new_sp = jnp.where(sp > 0.0, sp - 1.0, sp)
    new_sp = jnp.where(saved, jnp.float32(save_period_const), new_sp)

  wsp = wsmall_ref[2][:D, :LD]                             # save_proj placed in last-slot lanes
  bsp = bias_ref[7:8, :LD]
  save_embed = jnp.dot(new_x, wsp, preferred_element_type=jnp.float32) + bsp
  new_bank = jnp.where(saved, mem_shift + save_embed, mem) # exact splice (shifted bank has 0s)
  new_mask = jnp.where(saved, mask_sh_f, mask_f)

  # ---- single lane-dense store: [bank | x | mask | period | pad] ----
  bn = data.shape[0]
  pad_w = out_ref.shape[1] - (LD + D + L + 1)
  pieces = [new_bank, new_x, new_mask, new_sp]
  if pad_w > 0:
    pieces.append(jnp.zeros((bn, pad_w), jnp.float32))
  out_ref[...] = jnp.concatenate(pieces, axis=1)


def init_params(key, dim_in, hidden_dim):
  """Deterministic synthetic parameters (PyTorch (out, in) layout)."""
  def xavier(k, shape):
    fan_out, fan_in = shape
    lim = (6.0 / (fan_in + fan_out)) ** 0.5
    return jax.random.uniform(k, shape, jnp.float32, -lim, lim)

  ks = jax.random.split(key, 5)
  in_proj = xavier(ks[0], (3 * dim_in, dim_in))            # MHA in_proj_weight
  return dict(
      wq=in_proj[:dim_in], wk=in_proj[dim_in:2 * dim_in], wv=in_proj[2 * dim_in:],
      bq=jnp.zeros((dim_in,), jnp.float32),
      bk=jnp.zeros((dim_in,), jnp.float32),
      bv=jnp.zeros((dim_in,), jnp.float32),
      wo=xavier(ks[1], (dim_in, dim_in)), bo=jnp.zeros((dim_in,), jnp.float32),
      w1=xavier(ks[2], (hidden_dim, dim_in)), b1=jnp.zeros((hidden_dim,), jnp.float32),
      w2=xavier(ks[3], (dim_in, hidden_dim)), b2=jnp.zeros((dim_in,), jnp.float32),
      g1=jnp.ones((dim_in,), jnp.float32), be1=jnp.zeros((dim_in,), jnp.float32),
      g2=jnp.ones((dim_in,), jnp.float32), be2=jnp.zeros((dim_in,), jnp.float32),
      ws=xavier(ks[4], (dim_in, dim_in)), bs=jnp.zeros((dim_in,), jnp.float32),
  )


def pack_memory_bank_weights(params, *, mem_len, num_heads=8):
  """One-time weight packing (hoisted out of the per-call path)."""
  f32 = jnp.float32
  D = params['wq'].shape[0]
  HID = params['w1'].shape[0]
  L, H = int(mem_len), int(num_heads)
  assert D % H == 0
  hd = D // H
  LD = L * D
  assert LD % 128 == 0, "memory_bank_len * dim_in must be a multiple of 128"
  HP, LHP = _HP, L * _HP
  XP = _round_up(D, 128)
  meta = LD + XP
  PDW = LD + XP + _META_W                                  # fused-projection input width
  PW = 3 * LD + LHP
  scale = 1.0 / float(hd) ** 0.5

  t = lambda w: jnp.transpose(jnp.asarray(w, f32))
  eye_l = jnp.eye(L, dtype=f32)

  # fused K | Q(rep, scaled) | V | key-padding-expansion projection
  w_big = jnp.zeros((PDW, PW), f32)
  w_big = w_big.at[0:LD, 0:LD].set(jnp.kron(eye_l, t(params['wk'])))
  w_big = w_big.at[LD:LD + D, LD:2 * LD].set(jnp.tile(t(params['wq']) * scale, (1, L)))
  w_big = w_big.at[0:LD, 2 * LD:3 * LD].set(jnp.kron(eye_l, t(params['wv'])))
  mask_expand = jnp.zeros((L, LHP), f32)
  for l in range(L):
    mask_expand = mask_expand.at[l, l * HP:l * HP + H].set(-1e9)
  w_big = w_big.at[meta:meta + L, 3 * LD:].set(mask_expand)
  b_big = jnp.concatenate([
      jnp.tile(jnp.asarray(params['bk'], f32), L),
      jnp.tile(jnp.asarray(params['bq'], f32) * scale, L),
      jnp.tile(jnp.asarray(params['bv'], f32), L),
      jnp.tile(jnp.concatenate([jnp.zeros((H,), f32),
                                jnp.full((HP - H,), -1e9, f32)]), L)])
  w_big = w_big.at[meta + 2 * L + 2, :].set(b_big)         # constant-1 lane carries biases

  # head-space one-hot helpers
  head_of_dim = jnp.arange(D) // hd
  hh = (head_of_dim[:, None] == jnp.arange(H)[None, :]).astype(f32)   # (D, H)
  hh_c = jnp.pad(hh, ((0, 0), (0, HP - H)))                            # (D, HP)
  hh_r = jnp.pad(hh.T, ((0, HP - H), (0, 0)))                          # (HP, D)

  RM = max(LD, LHP)
  MIDW = _round_up(2 * LHP + 2 * LD + D, 128)
  w_mid = jnp.zeros((RM, MIDW), f32)
  w_mid = w_mid.at[0:LD, 0:LHP].set(jnp.kron(eye_l, hh_c))                     # hb
  w_mid = w_mid.at[0:HP, LHP:2 * LHP].set(jnp.tile(jnp.eye(HP, dtype=f32), (1, L)))  # rep
  w_mid = w_mid.at[0:LHP, 2 * LHP:2 * LHP + LD].set(jnp.kron(eye_l, hh_r))     # hbt
  w_mid = w_mid.at[0:HP, 2 * LHP + LD:2 * LHP + 2 * LD].set(jnp.tile(hh_r, (1, L)))  # eld
  w_mid = w_mid.at[0:LD, 2 * LHP + 2 * LD:2 * LHP + 2 * LD + D].set(
      jnp.tile(t(params['wo']), (L, 1)))                                        # wot

  SR = _round_up(max(D, HID), 8)
  SC = _round_up(max(D, HID, LD), 128)
  w_small = jnp.zeros((3, SR, SC), f32)
  w_small = w_small.at[0, :D, :HID].set(t(params['w1']))
  w_small = w_small.at[1, :HID, :D].set(t(params['w2']))
  ws_placed = jnp.zeros((D, LD), f32).at[:, LD - D:].set(t(params['ws']))
  w_small = w_small.at[2, :D, :LD].set(ws_placed)

  BC = _round_up(max(D, HID, LD), 128)
  bias = jnp.zeros((8, BC), f32)
  bias = bias.at[0, :D].set(jnp.asarray(params['bo'], f32))
  bias = bias.at[1, :HID].set(jnp.asarray(params['b1'], f32))
  bias = bias.at[2, :D].set(jnp.asarray(params['b2'], f32))
  bias = bias.at[3, :D].set(jnp.asarray(params['g1'], f32))
  bias = bias.at[4, :D].set(jnp.asarray(params['be1'], f32))
  bias = bias.at[5, :D].set(jnp.asarray(params['g2'], f32))
  bias = bias.at[6, :D].set(jnp.asarray(params['be2'], f32))
  bias = bias.at[7, LD - D:LD].set(jnp.asarray(params['bs'], f32))

  return dict(w_big=w_big, w_mid=w_mid, w_small=w_small, bias=bias,
              dim=D, hidden=HID, heads=H, mem_len=L)


def _pick_block_n(n):
  """Row block multiple of 8, >= 2 grid steps when possible, capped for VMEM."""
  n8 = _round_up(max(n, 1), 8)
  if n8 <= 8:
    return 8, 8
  blk = min(512, _round_up(n8 // 2, 8))
  n_pad = _round_up(n8, blk)
  return blk, n_pad


def memory_bank_forward(packed, output_embedding, mem_bank, mem_padding_mask,
                        scores, save_period, *, save_thresh=0.4,
                        save_period_const=3, training=False):
  f32 = jnp.float32
  D, HID, H, L = packed['dim'], packed['hidden'], packed['heads'], packed['mem_len']
  N = output_embedding.shape[0]
  LD = L * D
  XP = _round_up(D, 128)
  DW = LD + XP + _META_W + LD
  OUT_W = LD + _round_up(D + L + 1, 128)

  # ----- per-call lane-aligned data slab: [mem | x,pad | meta | shifted mem] -----
  mem_flat = mem_bank.reshape(N, LD).astype(f32)
  mem_shift = jnp.concatenate(
      [mem_bank[:, 1:], jnp.zeros((N, 1, D), mem_bank.dtype)], axis=1
  ).reshape(N, LD).astype(f32)
  x_pad = jnp.pad(output_embedding.astype(f32), ((0, 0), (0, XP - D)))
  mask_f = mem_padding_mask.reshape(N, L).astype(f32)
  mask_shift = jnp.concatenate([mask_f[:, 1:], jnp.zeros((N, 1), f32)], axis=1)
  meta = jnp.concatenate([
      mask_f, mask_shift,
      scores.reshape(N, 1).astype(f32),
      save_period.reshape(N, 1).astype(f32),
      jnp.ones((N, 1), f32),                               # constant-1 lane (bias carrier)
  ], axis=1)
  meta = jnp.pad(meta, ((0, 0), (0, _META_W - meta.shape[1])))
  data = jnp.concatenate([mem_flat, x_pad, meta, mem_shift], axis=1)   # (N, DW)

  block_n, n_pad = _pick_block_n(N)
  if n_pad > N:
    data = jnp.pad(data, ((0, n_pad - N), (0, 0)))
  grid = (n_pad // block_n,)

  w_big, w_mid = packed['w_big'], packed['w_mid']
  w_small, bias = packed['w_small'], packed['bias']

  kernel = functools.partial(
      _memory_bank_kernel, dim=D, hid=HID, heads=H, mem_len=L,
      save_thresh=float(save_thresh), save_period_const=int(save_period_const),
      training=bool(training), eps=1e-5)

  out = pl.pallas_call(
      kernel,
      grid=grid,
      in_specs=[
          pl.BlockSpec((block_n, DW), lambda i: (i, 0)),
          pl.BlockSpec(w_big.shape, lambda i: (0, 0)),
          pl.BlockSpec(w_mid.shape, lambda i: (0, 0)),
          pl.BlockSpec(w_small.shape, lambda i: (0, 0, 0)),
          pl.BlockSpec(bias.shape, lambda i: (0, 0)),
      ],
      out_specs=pl.BlockSpec((block_n, OUT_W), lambda i: (i, 0)),
      out_shape=jax.ShapeDtypeStruct((n_pad, OUT_W), f32),
      compiler_params=pltpu.CompilerParams(
          dimension_semantics=("parallel",)),
  )(data, w_big, w_mid, w_small, bias)

  new_bank = out[:N, 0:LD].reshape(N, L, D)
  new_x = out[:N, LD:LD + D]
  new_mask = out[:N, LD + D:LD + D + L] > 0.5
  new_sp = out[:N, LD + D + L].astype(jnp.int32)
  return new_x, new_bank, new_mask, new_sp


if __name__ == "__main__":
  key = jax.random.PRNGKey(0)
  N, D, HID, L = 16, 32, 64, 4            # tracks, dim_in, hidden_dim, memory_bank_len
  k0, k1, k2, k3, kp = jax.random.split(key, 5)
  params = init_params(kp, D, HID)
  packed = pack_memory_bank_weights(params, mem_len=L, num_heads=8)

  output_embedding = jax.random.normal(k0, (N, D), jnp.float32)
  mem_bank = jax.random.normal(k1, (N, L, D), jnp.float32)
  # track n has (n % (L+1)) filled memory slots; padding on the left (True = padded)
  n_filled = jnp.arange(N) % (L + 1)
  mem_padding_mask = jnp.arange(L)[None, :] < (L - n_filled)[:, None]
  scores = jax.random.uniform(k2, (N,), jnp.float32)
  save_period = jax.random.randint(k3, (N,), 0, 3)

  out = memory_bank_forward(
      packed, output_embedding, mem_bank, mem_padding_mask, scores, save_period,
      save_thresh=0.4, training=False)
  jax.block_until_ready(out)
  print("KERNEL_OK")
</pallas_src>

<mosaic_0001>
module attributes {stable_mosaic.version = 11 : i64} {
  func.func @_memory_bank_kernel(%arg0: i32, %arg1: memref<8x512xf32, #tpu.memory_space<vmem>>, %arg2: memref<384x896xf32, #tpu.memory_space<vmem>>, %arg3: memref<512x1408xf32, #tpu.memory_space<vmem>>, %arg4: memref<3x64x128xf32, #tpu.memory_space<vmem>>, %arg5: memref<8x128xf32, #tpu.memory_space<vmem>>, %arg6: memref<8x256xf32, #tpu.memory_space<vmem>>) attributes {dimension_semantics = [#tpu.dimension_semantics<parallel>], iteration_bounds = array<i64: 2>, scalar_prefetch = 0 : i64, scratch_operands = 0 : i64, tpu.core_type = #tpu.core_type<tc>, window_params = [{transform_indices = @transform_0, window_bounds = array<i64: 8, 512>}, {pipeline_mode = #tpu.pipeline_mode<synchronous>, transform_indices = @transform_1, window_bounds = array<i64: 384, 896>}, {pipeline_mode = #tpu.pipeline_mode<synchronous>, transform_indices = @transform_2, window_bounds = array<i64: 512, 1408>}, {pipeline_mode = #tpu.pipeline_mode<synchronous>, transform_indices = @transform_3, window_bounds = array<i64: 3, 64, 128>}, {pipeline_mode = #tpu.pipeline_mode<synchronous>, transform_indices = @transform_4, window_bounds = array<i64: 8, 128>}, {transform_indices = @transform_5, window_bounds = array<i64: 8, 256>}]} {
    %c0 = arith.constant 0 : index
    %c0_0 = arith.constant 0 : index
    %0 = vector.load %arg1[%c0, %c0_0] : memref<8x512xf32, #tpu.memory_space<vmem>>, vector<8x512xf32>
    %1 = vector.extract_strided_slice %0 {offsets = [0, 0], sizes = [8, 128], strides = [1, 1]} : vector<8x512xf32> to vector<8x128xf32>
    %2 = vector.extract_strided_slice %0 {offsets = [0, 128], sizes = [8, 32], strides = [1, 1]} : vector<8x512xf32> to vector<8x32xf32>
    %3 = vector.extract_strided_slice %0 {offsets = [0, 256], sizes = [8, 4], strides = [1, 1]} : vector<8x512xf32> to vector<8x4xf32>
    %4 = vector.extract_strided_slice %0 {offsets = [0, 260], sizes = [8, 4], strides = [1, 1]} : vector<8x512xf32> to vector<8x4xf32>
    %5 = vector.extract_strided_slice %0 {offsets = [0, 264], sizes = [8, 1], strides = [1, 1]} : vector<8x512xf32> to vector<8x1xf32>
    %6 = vector.extract_strided_slice %0 {offsets = [0, 265], sizes = [8, 1], strides = [1, 1]} : vector<8x512xf32> to vector<8x1xf32>
    %7 = vector.extract_strided_slice %0 {offsets = [0, 384], sizes = [8, 128], strides = [1, 1]} : vector<8x512xf32> to vector<8x128xf32>
    %8 = vector.extract_strided_slice %0 {offsets = [0, 0], sizes = [8, 384], strides = [1, 1]} : vector<8x512xf32> to vector<8x384xf32>
    %c0_1 = arith.constant 0 : index
    %c0_2 = arith.constant 0 : index
    %9 = vector.load %arg2[%c0_1, %c0_2] : memref<384x896xf32, #tpu.memory_space<vmem>>, vector<384x896xf32>
    %cst = arith.constant dense<0.000000e+00> : vector<8x896xf32>
    %10 = tpu.matmul %8, %9, %cst {dimension_numbers = #tpu.dot_dimension_numbers<[1], [0], [0], [1], [0, 0, 1, 1], [], []>} : vector<8x384xf32>, vector<384x896xf32>, vector<8x896xf32> -> vector<8x896xf32>
    %11 = vector.extract_strided_slice %10 {offsets = [0, 0], sizes = [8, 128], strides = [1, 1]} : vector<8x896xf32> to vector<8x128xf32>
    %12 = vector.extract_strided_slice %10 {offsets = [0, 128], sizes = [8, 128], strides = [1, 1]} : vector<8x896xf32> to vector<8x128xf32>
    %13 = vector.extract_strided_slice %10 {offsets = [0, 256], sizes = [8, 128], strides = [1, 1]} : vector<8x896xf32> to vector<8x128xf32>
    %14 = vector.extract_strided_slice %10 {offsets = [0, 384], sizes = [8, 512], strides = [1, 1]} : vector<8x896xf32> to vector<8x512xf32>
    %c0_3 = arith.constant 0 : index
    %c0_4 = arith.constant 0 : index
    %15 = vector.load %arg3[%c0_3, %c0_4] : memref<512x1408xf32, #tpu.memory_space<vmem>>, vector<128x512xf32>
    %c0_5 = arith.constant 0 : index
    %c512 = arith.constant 512 : index
    %16 = vector.load %arg3[%c0_5, %c512] : memref<512x1408xf32, #tpu.memory_space<vmem>>, vector<128x512xf32>
    %c0_6 = arith.constant 0 : index
    %c1024 = arith.constant 1024 : index
    %17 = vector.load %arg3[%c0_6, %c1024] : memref<512x1408xf32, #tpu.memory_space<vmem>>, vector<512x128xf32>
    %c0_7 = arith.constant 0 : index
    %c1152 = arith.constant 1152 : index
    %18 = vector.load %arg3[%c0_7, %c1152] : memref<512x1408xf32, #tpu.memory_space<vmem>>, vector<128x128xf32>
    %c0_8 = arith.constant 0 : index
    %c1280 = arith.constant 1280 : index
    %19 = vector.load %arg3[%c0_8, %c1280] : memref<512x1408xf32, #tpu.memory_space<vmem>>, vector<128x32xf32>
    %20 = arith.mulf %12, %11 : vector<8x128xf32>
    %cst_9 = arith.constant dense<0.000000e+00> : vector<8x512xf32>
    %21 = tpu.matmul %20, %15, %cst_9 {dimension_numbers = #tpu.dot_dimension_numbers<[1], [0], [0], [1], [0, 0, 1, 1], [], []>} : vector<8x128xf32>, vector<128x512xf32>, vector<8x512xf32> -> vector<8x512xf32>
    %22 = arith.addf %14, %21 : vector<8x512xf32>
    %23 = vector.extract_strided_slice %22 {offsets = [0, 0], sizes = [8, 128], strides = [1, 1]} : vector<8x512xf32> to vector<8x128xf32>
    %24 = vector.extract_strided_slice %22 {offsets = [0, 128], sizes = [8, 128], strides = [1, 1]} : vector<8x512xf32> to vector<8x128xf32>
    %25 = arith.maximumf %23, %24 : vector<8x128xf32>
    %26 = vector.extract_strided_slice %22 {offsets = [0, 256], sizes = [8, 128], strides = [1, 1]} : vector<8x512xf32> to vector<8x128xf32>
    %27 = arith.maximumf %25, %26 : vector<8x128xf32>
    %28 = vector.extract_strided_slice %22 {offsets = [0, 384], sizes = [8, 128], strides = [1, 1]} : vector<8x512xf32> to vector<8x128xf32>
    %29 = arith.maximumf %27, %28 : vector<8x128xf32>
    %cst_10 = arith.constant dense<0.000000e+00> : vector<8x512xf32>
    %30 = tpu.matmul %29, %16, %cst_10 {dimension_numbers = #tpu.dot_dimension_numbers<[1], [0], [0], [1], [0, 0, 1, 1], [], []>} : vector<8x128xf32>, vector<128x512xf32>, vector<8x512xf32> -> vector<8x512xf32>
    %31 = arith.subf %22, %30 : vector<8x512xf32>
    %32 = math.exp %31 : vector<8x512xf32>
    %33 = vector.extract_strided_slice %32 {offsets = [0, 0], sizes = [8, 128], strides = [1, 1]} : vector<8x512xf32> to vector<8x128xf32>
    %34 = vector.extract_strided_slice %32 {offsets = [0, 128], sizes = [8, 128], strides = [1, 1]} : vector<8x512xf32> to vector<8x128xf32>
    %35 = arith.addf %33, %34 : vector<8x128xf32>
    %36 = vector.extract_strided_slice %32 {offsets = [0, 256], sizes = [8, 128], strides = [1, 1]} : vector<8x512xf32> to vector<8x128xf32>
    %37 = arith.addf %35, %36 : vector<8x128xf32>
    %38 = vector.extract_strided_slice %32 {offsets = [0, 384], sizes = [8, 128], strides = [1, 1]} : vector<8x512xf32> to vector<8x128xf32>
    %39 = arith.addf %37, %38 : vector<8x128xf32>
    %40 = tpu.reciprocal %39 : vector<8x128xf32> -> vector<8x128xf32>
    %cst_11 = arith.constant dense<0.000000e+00> : vector<8x128xf32>
    %41 = tpu.matmul %32, %17, %cst_11 {dimension_numbers = #tpu.dot_dimension_numbers<[1], [0], [0], [1], [0, 0, 1, 1], [], []>} : vector<8x512xf32>, vector<512x128xf32>, vector<8x128xf32> -> vector<8x128xf32>
    %42 = arith.mulf %41, %13 : vector<8x128xf32>
    %cst_12 = arith.constant dense<0.000000e+00> : vector<8x128xf32>
    %43 = tpu.matmul %40, %18, %cst_12 {dimension_numbers = #tpu.dot_dimension_numbers<[1], [0], [0], [1], [0, 0, 1, 1], [], []>} : vector<8x128xf32>, vector<128x128xf32>, vector<8x128xf32> -> vector<8x128xf32>
    %44 = arith.mulf %42, %43 : vector<8x128xf32>
    %c0_13 = arith.constant 0 : index
    %c0_14 = arith.constant 0 : index
    %45 = vector.load %arg5[%c0_13, %c0_14] : memref<8x128xf32, #tpu.memory_space<vmem>>, vector<1x32xf32>
    %cst_15 = arith.constant dense<0.000000e+00> : vector<8x32xf32>
    %46 = tpu.matmul %44, %19, %cst_15 {dimension_numbers = #tpu.dot_dimension_numbers<[1], [0], [0], [1], [0, 0, 1, 1], [], []>} : vector<8x128xf32>, vector<128x32xf32>, vector<8x32xf32> -> vector<8x32xf32>
    %47 = vector.broadcast %45 : vector<1x32xf32> to vector<8x32xf32>
    %48 = arith.addf %46, %47 : vector<8x32xf32>
    %c1 = arith.constant 1 : index
    %c0_16 = arith.constant 0 : index
    %49 = vector.load %arg5[%c1, %c0_16] : memref<8x128xf32, #tpu.memory_space<vmem>>, vector<1x64xf32>
    %c2 = arith.constant 2 : index
    %c0_17 = arith.constant 0 : index
    %50 = vector.load %arg5[%c2, %c0_17] : memref<8x128xf32, #tpu.memory_space<vmem>>, vector<1x32xf32>
    %c3 = arith.constant 3 : index
    %c0_18 = arith.constant 0 : index
    %51 = vector.load %arg5[%c3, %c0_18] : memref<8x128xf32, #tpu.memory_space<vmem>>, vector<1x32xf32>
    %c4 = arith.constant 4 : index
    %c0_19 = arith.constant 0 : index
    %52 = vector.load %arg5[%c4, %c0_19] : memref<8x128xf32, #tpu.memory_space<vmem>>, vector<1x32xf32>
    %c5 = arith.constant 5 : index
    %c0_20 = arith.constant 0 : index
    %53 = vector.load %arg5[%c5, %c0_20] : memref<8x128xf32, #tpu.memory_space<vmem>>, vector<1x32xf32>
    %c6 = arith.constant 6 : index
    %c0_21 = arith.constant 0 : index
    %54 = vector.load %arg5[%c6, %c0_21] : memref<8x128xf32, #tpu.memory_space<vmem>>, vector<1x32xf32>
    %55 = arith.addf %2, %48 : vector<8x32xf32>
    %cst_22 = arith.constant dense<0.000000e+00> : vector<8xf32>
    %56 = vector.multi_reduction <add>, %55, %cst_22 [1] : vector<8x32xf32> to vector<8xf32>
    %57 = vector.shape_cast %56 : vector<8xf32> to vector<8x1xf32>
    %cst_23 = arith.constant 3.200000e+01 : f32
    %58 = vector.broadcast %cst_23 : f32 to vector<8x1xf32>
    %59 = arith.divf %57, %58 : vector<8x1xf32>
    %60 = vector.broadcast %59 : vector<8x1xf32> to vector<8x32xf32>
    %61 = arith.subf %55, %60 : vector<8x32xf32>
    %62 = arith.mulf %61, %61 : vector<8x32xf32>
    %cst_24 = arith.constant dense<0.000000e+00> : vector<8xf32>
    %63 = vector.multi_reduction <add>, %62, %cst_24 [1] : vector<8x32xf32> to vector<8xf32>
    %64 = vector.shape_cast %63 : vector<8xf32> to vector<8x1xf32>
    %cst_25 = arith.constant 3.200000e+01 : f32
    %65 = vector.broadcast %cst_25 : f32 to vector<8x1xf32>
    %66 = arith.divf %64, %65 : vector<8x1xf32>
    %cst_26 = arith.constant 9.99999974E-6 : f32
    %67 = vector.broadcast %cst_26 : f32 to vector<8x1xf32>
    %68 = arith.addf %66, %67 : vector<8x1xf32>
    %69 = math.rsqrt %68 : vector<8x1xf32>
    %70 = vector.broadcast %69 : vector<8x1xf32> to vector<8x32xf32>
    %71 = arith.mulf %61, %70 : vector<8x32xf32>
    %72 = vector.broadcast %51 : vector<1x32xf32> to vector<8x32xf32>
    %73 = arith.mulf %71, %72 : vector<8x32xf32>
    %74 = vector.broadcast %52 : vector<1x32xf32> to vector<8x32xf32>
    %75 = arith.addf %73, %74 : vector<8x32xf32>
    %c0_27 = arith.constant 0 : index
    %c0_28 = arith.constant 0 : index
    %c0_29 = arith.constant 0 : index
    %76 = vector.load %arg4[%c0_27, %c0_28, %c0_29] : memref<3x64x128xf32, #tpu.memory_space<vmem>>, vector<1x64x128xf32>
    %77 = vector.shape_cast %76 : vector<1x64x128xf32> to vector<64x128xf32>
    %78 = vector.extract_strided_slice %77 {offsets = [0, 0], sizes = [32, 64], strides = [1, 1]} : vector<64x128xf32> to vector<32x64xf32>
    %c1_30 = arith.constant 1 : index
    %c0_31 = arith.constant 0 : index
    %c0_32 = arith.constant 0 : index
    %79 = vector.load %arg4[%c1_30, %c0_31, %c0_32] : memref<3x64x128xf32, #tpu.memory_space<vmem>>, vector<1x64x128xf32>
    %80 = vector.shape_cast %79 : vector<1x64x128xf32> to vector<64x128xf32>
    %81 = vector.extract_strided_slice %80 {offsets = [0, 0], sizes = [64, 32], strides = [1, 1]} : vector<64x128xf32> to vector<64x32xf32>
    %cst_33 = arith.constant dense<0.000000e+00> : vector<8x64xf32>
    %82 = tpu.matmul %75, %78, %cst_33 {dimension_numbers = #tpu.dot_dimension_numbers<[1], [0], [0], [1], [0, 0, 1, 1], [], []>} : vector<8x32xf32>, vector<32x64xf32>, vector<8x64xf32> -> vector<8x64xf32>
    %83 = vector.broadcast %49 : vector<1x64xf32> to vector<8x64xf32>
    %84 = arith.addf %82, %83 : vector<8x64xf32>
    %cst_34 = arith.constant 0.000000e+00 : f32
    %85 = vector.broadcast %cst_34 : f32 to vector<8x64xf32>
    %86 = arith.maximumf %84, %85 : vector<8x64xf32>
    %cst_35 = arith.constant dense<0.000000e+00> : vector<8x32xf32>
    %87 = tpu.matmul %86, %81, %cst_35 {dimension_numbers = #tpu.dot_dimension_numbers<[1], [0], [0], [1], [0, 0, 1, 1], [], []>} : vector<8x64xf32>, vector<64x32xf32>, vector<8x32xf32> -> vector<8x32xf32>
    %88 = vector.broadcast %50 : vector<1x32xf32> to vector<8x32xf32>
    %89 = arith.addf %87, %88 : vector<8x32xf32>
    %90 = arith.addf %75, %89 : vector<8x32xf32>
    %cst_36 = arith.constant dense<0.000000e+00> : vector<8xf32>
    %91 = vector.multi_reduction <add>, %90, %cst_36 [1] : vector<8x32xf32> to vector<8xf32>
    %92 = vector.shape_cast %91 : vector<8xf32> to vector<8x1xf32>
    %cst_37 = arith.constant 3.200000e+01 : f32
    %93 = vector.broadcast %cst_37 : f32 to vector<8x1xf32>
    %94 = arith.divf %92, %93 : vector<8x1xf32>
    %95 = vector.broadcast %94 : vector<8x1xf32> to vector<8x32xf32>
    %96 = arith.subf %90, %95 : vector<8x32xf32>
    %97 = arith.mulf %96, %96 : vector<8x32xf32>
    %cst_38 = arith.constant dense<0.000000e+00> : vector<8xf32>
    %98 = vector.multi_reduction <add>, %97, %cst_38 [1] : vector<8x32xf32> to vector<8xf32>
    %99 = vector.shape_cast %98 : vector<8xf32> to vector<8x1xf32>
    %cst_39 = arith.constant 3.200000e+01 : f32
    %100 = vector.broadcast %cst_39 : f32 to vector<8x1xf32>
    %101 = arith.divf %99, %100 : vector<8x1xf32>
    %cst_40 = arith.constant 9.99999974E-6 : f32
    %102 = vector.broadcast %cst_40 : f32 to vector<8x1xf32>
    %103 = arith.addf %101, %102 : vector<8x1xf32>
    %104 = math.rsqrt %103 : vector<8x1xf32>
    %105 = vector.broadcast %104 : vector<8x1xf32> to vector<8x32xf32>
    %106 = arith.mulf %96, %105 : vector<8x32xf32>
    %107 = vector.broadcast %53 : vector<1x32xf32> to vector<8x32xf32>
    %108 = arith.mulf %106, %107 : vector<8x32xf32>
    %109 = vector.broadcast %54 : vector<1x32xf32> to vector<8x32xf32>
    %110 = arith.addf %108, %109 : vector<8x32xf32>
    %111 = vector.extract_strided_slice %3 {offsets = [0, 3], sizes = [8, 1], strides = [1, 1]} : vector<8x4xf32> to vector<8x1xf32>
    %cst_41 = arith.constant 0.000000e+00 : f32
    %112 = vector.broadcast %cst_41 : f32 to vector<8x1xf32>
    %113 = arith.cmpf oeq, %111, %112 : vector<8x1xf32>
    %114 = vector.shape_cast %113 : vector<8x1xi1> to vector<8x1xi1>
    %115 = vector.broadcast %114 : vector<8x1xi1> to vector<8x32xi1>
    %116 = arith.select %115, %110, %2 : vector<8x32xi1>, vector<8x32xf32>
    %cst_42 = arith.constant 0.000000e+00 : f32
    %117 = vector.broadcast %cst_42 : f32 to vector<8x1xf32>
    %118 = arith.cmpf oeq, %6, %117 : vector<8x1xf32>
    %cst_43 = arith.constant 4.000000e-01 : f32
    %119 = vector.broadcast %cst_43 : f32 to vector<8x1xf32>
    %120 = arith.cmpf ogt, %5, %119 : vector<8x1xf32>
    %121 = arith.andi %118, %120 : vector<8x1xi1>
    %cst_44 = arith.constant 0.000000e+00 : f32
    %122 = vector.broadcast %cst_44 : f32 to vector<8x1xf32>
    %123 = arith.cmpf ogt, %6, %122 : vector<8x1xf32>
    %cst_45 = arith.constant 1.000000e+00 : f32
    %124 = vector.broadcast %cst_45 : f32 to vector<8x1xf32>
    %125 = arith.subf %6, %124 : vector<8x1xf32>
    %126 = arith.select %123, %125, %6 : vector<8x1xi1>, vector<8x1xf32>
    %cst_46 = arith.constant 3.000000e+00 : f32
    %127 = vector.broadcast %cst_46 : f32 to vector<8x1xf32>
    %128 = arith.select %121, %127, %126 : vector<8x1xi1>, vector<8x1xf32>
    %c2_47 = arith.constant 2 : index
    %c0_48 = arith.constant 0 : index
    %c0_49 = arith.constant 0 : index
    %129 = vector.load %arg4[%c2_47, %c0_48, %c0_49] : memref<3x64x128xf32, #tpu.memory_space<vmem>>, vector<1x64x128xf32>
    %130 = vector.shape_cast %129 : vector<1x64x128xf32> to vector<64x128xf32>
    %131 = vector.extract_strided_slice %130 {offsets = [0, 0], sizes = [32, 128], strides = [1, 1]} : vector<64x128xf32> to vector<32x128xf32>
    %c7 = arith.constant 7 : index
    %c0_50 = arith.constant 0 : index
    %132 = vector.load %arg5[%c7, %c0_50] : memref<8x128xf32, #tpu.memory_space<vmem>>, vector<1x128xf32>
    %cst_51 = arith.constant dense<0.000000e+00> : vector<8x128xf32>
    %133 = tpu.matmul %116, %131, %cst_51 {dimension_numbers = #tpu.dot_dimension_numbers<[1], [0], [0], [1], [0, 0, 1, 1], [], []>} : vector<8x32xf32>, vector<32x128xf32>, vector<8x128xf32> -> vector<8x128xf32>
    %134 = vector.broadcast %132 : vector<1x128xf32> to vector<8x128xf32>
    %135 = arith.addf %133, %134 : vector<8x128xf32>
    %136 = arith.addf %7, %135 : vector<8x128xf32>
    %137 = vector.shape_cast %121 : vector<8x1xi1> to vector<8x1xi1>
    %138 = vector.broadcast %137 : vector<8x1xi1> to vector<8x128xi1>
    %139 = arith.select %138, %136, %1 : vector<8x128xi1>, vector<8x128xf32>
    %140 = vector.shape_cast %121 : vector<8x1xi1> to vector<8x1xi1>
    %141 = vector.broadcast %140 : vector<8x1xi1> to vector<8x4xi1>
    %142 = arith.select %141, %4, %3 : vector<8x4xi1>, vector<8x4xf32>
    %cst_52 = arith.constant 0.000000e+00 : f32
    %143 = vector.broadcast %cst_52 : f32 to vector<8x91xf32>
    %144 = tpu.concatenate %139, %116, %142, %128, %143 in 1 : vector<8x128xf32>, vector<8x32xf32>, vector<8x4xf32>, vector<8x1xf32>, vector<8x91xf32> -> vector<8x256xf32>
    %c0_53 = arith.constant 0 : index
    %c0_54 = arith.constant 0 : index
    %145 = vector.load %arg6[%c0_53, %c0_54] : memref<8x256xf32, #tpu.memory_space<vmem>>, vector<8x256xf32>
    tpu.vector_store %arg6[%c0_53, %c0_54], %144 {strides = array<i32>} : memref<8x256xf32, #tpu.memory_space<vmem>>, vector<8x256xf32>,
    return
  }
  func.func @transform_0(%arg0: i32) -> (i32, i32) {
    %c0_i32 = arith.constant 0 : i32
    %c0_i32_0 = arith.constant 0 : i32
    return %arg0, %c0_i32 : i32, i32
  }
  func.func @transform_1(%arg0: i32) -> (i32, i32) {
    %c0_i32 = arith.constant 0 : i32
    %c0_i32_0 = arith.constant 0 : i32
    %c0_i32_1 = arith.constant 0 : i32
    return %c0_i32, %c0_i32_0 : i32, i32
  }
  func.func @transform_2(%arg0: i32) -> (i32, i32) {
    %c0_i32 = arith.constant 0 : i32
    %c0_i32_0 = arith.constant 0 : i32
    %c0_i32_1 = arith.constant 0 : i32
    return %c0_i32, %c0_i32_0 : i32, i32
  }
  func.func @transform_3(%arg0: i32) -> (i32, i32, i32) {
    %c0_i32 = arith.constant 0 : i32
    %c0_i32_0 = arith.constant 0 : i32
    %c0_i32_1 = arith.constant 0 : i32
    %c0_i32_2 = arith.constant 0 : i32
    return %c0_i32, %c0_i32_0, %c0_i32_1 : i32, i32, i32
  }
  func.func @transform_4(%arg0: i32) -> (i32, i32) {
    %c0_i32 = arith.constant 0 : i32
    %c0_i32_0 = arith.constant 0 : i32
    %c0_i32_1 = arith.constant 0 : i32
    return %c0_i32, %c0_i32_0 : i32, i32
  }
  func.func @transform_5(%arg0: i32) -> (i32, i32) {
    %c0_i32 = arith.constant 0 : i32
    %c0_i32_0 = arith.constant 0 : i32
    return %arg0, %c0_i32 : i32, i32
  }
}

</mosaic_0001>

<bundles_post_ra>
// kernel: tpu_custom_call.1
= control target key start
LH: loop header
LB: loop body
LE: loop exit
PB: predicated region body
PF: predicated region fallthrough
CT: control target
= control target key end

     0   :  { %10 = vsyncpa [#allocation3], 0  ;;  %s3593_s0 = inlined_call_operand.hbm [shape: f32[16,512], index: 0, kind: input, shape index: {}]   ;;  %s3594_s1 = inlined_call_operand.hbm [shape: f32[384,896], index: 1, kind: input, shape index: {}]   ;;  %s3595_s2 = inlined_call_operand.hbm [shape: f32[512,1408], index: 2, kind: input, shape index: {}]   ;;  %s3596_s3 = inlined_call_operand.hbm [shape: f32[3,64,128], index: 3, kind: input, shape index: {}]   ;;  %s3597_s4 = inlined_call_operand.hbm [shape: f32[8,128], index: 4, kind: input, shape index: {}]   ;;  %s3598_s5 = inlined_call_operand.hbm [shape: f32[16,256], index: 5, kind: output, shape index: {}]  }
   0x1   :  { %12 = vsyncpa [#allocation3 + $0x1], 0 }
   0x2   :  { %13 = vsyncpa [#allocation6], 0 }
   0x3   :  { %14 = vsyncpa [#allocation9], 0 }
   0x4   :  { %15 = vsyncpa [#allocation4], 0 }
   0x5   :  { %17 = vsyncpa [#allocation4 + $0x1], 0  ;;  %s3235_s18 = smov 0   ;;  %s3237_s19 = smov 0  }
   0x6   :  { %s3239_s20 = smov 0   ;;  %s3241_s21 = smov 0  }
   0x7 LB: > { %s3184_s22 = smov [#allocation5]   ;;  %s3256_s24 = sadd.s32 4294967295, %s3182_s21   ;;  %s3182_s21 = sphi %s3241_s21, %s3624_s21   ;;  %s3178_s20 = sphi %s3239_s20, %s3623_s20   ;;  %s3174_s19 = sphi %s3237_s19, %s3622_s19   ;;  %s3170_s18 = sphi %s3235_s18, %s3621_s18  }
   0x8   : > { %s176_s23 = sshll.u32 %s3184_s22, 4  ;;  %p2498_p0 = scmp.ge.s32.totalorder %s3182_s21, 1  ;;  %s177_s23 = int_to_ptr.vmem [resolvable:$true] %s176_s23 }
   0x9   : > { %p3599_p1 = scmp.eq.s32.totalorder %s3256_s24, 0  ;;  %p164_p2 = scmp.lt.s32.totalorder %s3182_s21, 3 }
   0xa   : > { %s3185_s26 = smov [#allocation8]   ;;  %s3186_s29 = smov [#allocation7]  }
   0xb   : > { %p3261_p3 = pnand %p2498_p0, %p164_p2  ;;  %s202_s27 = sshll.u32 %s3185_s26, 4  ;;  %s3274_s27 = int_to_ptr.vmem [resolvable:$true] %s202_s27 }
   0xc   : > { %s3276_s30 = sshll.u32 %s3186_s29, 4  ;;  %s2989_s6 = scalar_lea.vmem %s177_s23, 43008  ;;  %s190_s30 = int_to_ptr.vmem [resolvable:$true] %s3276_s30 }
   0xd   : > { %s3603_s25 = scalar_select %p3261_p3, 1, 0 }
   0xe   : > { %p2874_p5 = pneg %p3261_p3  ;;  %p2990_p8 = scmp.ne.s32.totalorder %s177_s23, %s2989_s6 }
   0xf   : > { %p2997_p11 = scmp.lt.s32.totalorder %s177_s23, %s177_s23  ;;  %p2998_p12 = scmp.lt.s32.totalorder %s2989_s6, %s2989_s6 }
  0x10   : > { %p3270_p6 = pnand %p2874_p5, %p3599_p1 }
  0x11   : > { %p2999_p13 = por %p2998_p12, %p2997_p11 }
  0x12   : > { %p2980_p7 = pneg %p3270_p6 }
  0x14   : > { %p2992_p9 = pnand %p2990_p8, %p2980_p7 }
  0x16   : > { %p2993_p10 = pneg %p2992_p9 }
  0x18   : > { %p3000_p0 = pnand %p2999_p13, %p2993_p10 }
  0x1a   : > { %3003 = shalt.err (!%p3000_p0)
}
  0x1b   : > { %s3187_s7 = smov 896   ;;  %s3188_s8 = smov 56  }
  0x1c   : > { %2877 = dma.hbm_to_vmem [thread:$0]  (!%p3270_p6), %s3594_s1, 43008, %s177_s23, [#allocation6], %s3187_s7, %s3187_s7, %s3188_s8  }
  0x1d   : > { %s3015_s11 = scalar_lea.vmem %s3274_s27, 3072  ;;  %p3023_p9 = scmp.lt.s32.totalorder %s3274_s27, %s3274_s27 }
  0x1e   : > { %p3016_p2 = scmp.ne.s32.totalorder %s3274_s27, %s3015_s11  ;;  %p3024_p10 = scmp.lt.s32.totalorder %s3015_s11, %s3015_s11 }
  0x20   : > { %p3018_p5 = pnand %p3016_p2, %p2980_p7  ;;  %p3025_p11 = por %p3024_p10, %p3023_p9 }
  0x22   : > { %p3019_p8 = pneg %p3018_p5 }
  0x24   : > { %p3026_p12 = pnand %p3025_p11, %p3019_p8 }
  0x26   : > { %3029 = shalt.err (!%p3026_p12)
}
  0x27   : > { %s3189_s12 = smov 128   ;;  %s3190_s13 = smov 8  }
  0x28   : > { %2883 = dma.hbm_to_vmem [thread:$0]  (!%p3270_p6), %s3596_s3, 3072, %s3274_s27, [#allocation9], %s3189_s12, %s3189_s12, %s3190_s13  }
  0x29   : > { %s3041_s16 = scalar_lea.vmem %s190_s30, 90112  ;;  %p3049_p5 = scmp.lt.s32.totalorder %s190_s30, %s190_s30 }
  0x2a   : > { %p3042_p13 = scmp.ne.s32.totalorder %s190_s30, %s3041_s16  ;;  %p3050_p8 = scmp.lt.s32.totalorder %s3041_s16, %s3041_s16 }
  0x2c   : > { %p3044_p0 = pnand %p3042_p13, %p2980_p7  ;;  %p3051_p9 = por %p3050_p8, %p3049_p5 }
  0x2e   : > { %p3045_p2 = pneg %p3044_p0 }
  0x30   : > { %p3052_p10 = pnand %p3051_p9, %p3045_p2 }
  0x32   : > { %3055 = shalt.err (!%p3052_p10)
}
  0x33   : > { %s3191_s17 = smov 1408   ;;  %s3192_s22 = smov 88  }
  0x34   : > { %2880 = dma.hbm_to_vmem [thread:$0]  (!%p3270_p6), %s3595_s2, 90112, %s190_s30, [#allocation6], %s3191_s17, %s3191_s17, %s3192_s22  }
  0x35   : > { %s3193_s27 = smov [#allocation10]  }
  0x36   : > { %s216_s29 = sshll.u32 %s3193_s27, 4  ;;  %s217_s29 = int_to_ptr.vmem [resolvable:$true] %s216_s29 }
  0x37   : > { %s3067_s6 = scalar_lea.vmem %s217_s29, 128  ;;  %p3075_p0 = scmp.lt.s32.totalorder %s217_s29, %s217_s29 }
  0x38   : > { %p3068_p11 = scmp.ne.s32.totalorder %s217_s29, %s3067_s6  ;;  %p3076_p2 = scmp.lt.s32.totalorder %s3067_s6, %s3067_s6 }
  0x3a   : > { %p3070_p12 = pnand %p3068_p11, %p2980_p7  ;;  %p3077_p5 = por %p3076_p2, %p3075_p0 }
  0x3c   : > { %p3071_p13 = pneg %p3070_p12 }
  0x3e   : > { %p3078_p8 = pnand %p3077_p5, %p3071_p13 }
  0x40   : > { %3081 = shalt.err (!%p3078_p8)
}
  0x41   : > { %2886 = dma.hbm_to_vmem [thread:$0]  (!%p3270_p6), %s3597_s4, 128, %s217_s29, [#allocation9]  }
  0x42   : > { %s2497_s30 = sadd.s32 4294967294, %s3182_s21   ;;  %s3320_s28 = sadd.s32 1, %s3182_s21  }
  0x43   : > { %s27_s9 = ssub.s32 %s3182_s21, %s3320_s28  ;;  %s30_s10 = sadd.s32 1, %s3178_s20 }
  0x44   : > { %p28_p7 = scmp.eq.s32.totalorder %s27_s9, 0  ;;  %p37_p9 = scmp.ne.s32.totalorder %s3178_s20, %s3174_s19 }
  0x45   : > { %p38_p10 = scmp.eq.s32.totalorder %s3182_s21, 0  ;;  %p43_p11 = scmp.ne.s32.totalorder %s3174_s19, %s3170_s18 }
  0x46   : > { %s3331_s11 = scalar_select %p28_p7, %s3178_s20, %s30_s10  }
  0x47   : > { %p3333_p12 = por %p38_p10, %p37_p9  ;;  %p3339_p6 = por %p3599_p1, %p43_p11 }
  0x48   : > { %p151_p13 = scmp.eq.s32.totalorder %s3256_s24, 1  ;;  %p157_p0 = scmp.eq.s32.totalorder %s2497_s30, 1 }
  0x49   : > { %s3606_s13 = scalar_select %p3339_p6, 1, 0 }
  0x4a   : > { %p2899_p2 = scmp.lt.s32.totalorder %s3182_s21, 2  ;;  %s227_s14 = sand.u32 1, %s3178_s20  }
  0x4b   : > { %p3346_p5 = por %p151_p13, %p37_p9  ;;  %p3350_p8 = por %p157_p0, %p43_p11 }
  0x4c   : > { %s2504_s17 = sshll.u32 %s227_s14, 5  ;;  %s2531_s22 = sshll.u32 %s3182_s21, 9 }
  0x4d   : > { %s3607_s15 = scalar_select %p3346_p5, 1, 0 }
  0x4e   : > { %s3608_s16 = scalar_select %p3350_p8, 1, 0 }
  0x4f   : > { %s3358_s27 = scalar_lea.hbm %s3593_s0, %s2531_s22  ;;  %s231_s29 = scalar_lea.vmem [#allocation2], %s2504_s17 }
  0x50   : > { %s239_s6 = sshll.u32 %s231_s29, 4  ;;  %p3362_p7 = pnand %p2899_p2, %p3333_p12  ;;  %s240_s6 = int_to_ptr.vmem [resolvable:$true] %s239_s6 }
  0x51   : > { %s228_s8 = scalar_lea.sflag [#allocation3], %s227_s14  ;;  %s3082_s30 = scalar_lea.hbm %s3358_s27, 512 }
  0x52   : > { %p3083_p9 = scmp.ne.s32.totalorder %s3358_s27, %s3082_s30  ;;  %p3084_p10 = pneg %p3362_p7 }
  0x53   : > { %s3087_s22 = scalar_lea.hbm %s3593_s0, 1024  ;;  %p3088_p0 = scmp.lt.s32.totalorder %s3358_s27, %s3593_s0 }
  0x54   : > { %p3085_p11 = pnand %p3084_p10, %p3083_p9  ;;  %p3089_p12 = scmp.lt.s32.totalorder %s3087_s22, %s3082_s30 }
  0x56   : > { %p3086_p13 = pneg %p3085_p11  ;;  %p3090_p2 = por %p3089_p12, %p3088_p0 }
  0x58   : > { %p3091_p4 = pnand %p3090_p2, %p3086_p13 }
  0x5a   : > { %3094 = shalt.err (!%p3091_p4)
}
  0x5b   : > { %s3095_s12 = scalar_lea.vmem %s240_s6, 512  ;;  %s3194_s14 = smov [#allocation2]  }
  0x5c   : > { %p3096_p1 = scmp.ne.s32.totalorder %s240_s6, %s3095_s12  ;;  %s3100_s26 = sshll.u32 %s3194_s14, 4  ;;  %s3101_s26 = int_to_ptr.vmem [resolvable:$false] %s3100_s26 }
  0x5d   : > { %s3102_s29 = scalar_lea.vmem %s3101_s26, 1024  ;;  %p3103_p9 = scmp.lt.s32.totalorder %s240_s6, %s3101_s26 }
  0x5e   : > { %p3098_p8 = pnand %p3096_p1, %p3084_p10  ;;  %p3104_p11 = scmp.lt.s32.totalorder %s3102_s29, %s3095_s12 }
  0x60   : > { %p3099_p5 = pneg %p3098_p8  ;;  %p3105_p6 = por %p3104_p11, %p3103_p9 }
  0x62   : > { %p3106_p3 = pnand %p3105_p6, %p3099_p5 }
  0x64   : > { %3109 = shalt.err (!%p3106_p3)
}
  0x65   : > { %2890 = dma.hbm_to_vmem [thread:$0]  (!%p3362_p7), %s3358_s27, 512, %s240_s6, %s228_s8  }
  0x66   : > { %p3610_p13 = scmp.ne.s32.totalorder %s3603_s25, 0 }
  0x67   : > { %s3383_s30 = sand.u32 (!%p3610_p13), 1, %s3174_s19   ;;  %p3611_p1 = scmp.ne.s32.totalorder (!%p3610_p13), %s3606_s13, 0 }
  0x68   : > { %248 = sbr.rel (%p3610_p13) target bundleno = 2477 (0x9ad), region = 40  ;;  %s2508_s9 = sshll.u32 (!%p3610_p13), %s3383_s30, 5 }
  0x69   : > { %s251_s10 = scalar_lea.sflag (!%p3610_p13), [#allocation3], %s3383_s30  ;;  %s3387_s22 = scalar_lea.vmem (!%p3610_p13), [#allocation2], %s2508_s9 }
  0x6d   : > { %3153 = dma.done.wait (%p3611_p1), %s251_s10, 512  }
  0x6e   : > { %3155 = vsyncadd (%p3611_p1), %s251_s10, 4294966784  ;;  %p3612_p3 = scmp.eq.s32.totalorder %s3256_s24, 0 }
  0x70   : > { %3157 = dma.done.wait (%p3612_p3), [#allocation6], 133120   ;;  %p3613_p4 = pmov %p3612_p3 }
  0x71   : > { %p3614_p6 = pmov %p3612_p3 }
  0x72   : > { %3159 = vsyncadd (%p3613_p4), [#allocation6], 4294834176 }
  0x73   : > { %3161 = dma.done.wait (%p3614_p6), [#allocation9], 3200   ;;  %p3615_p5 = pmov %p3612_p3 }
  0x74   : > { %v3195_v0 = vmov 0.0   ;;  %v407_v1 = vld [vmem:[#allocation5 + $0x350] sm:$0xff]  ;;  %v406_v2 = vld [vmem:[#allocation5 + $0x348] sm:$0xff]  ;;  %v400_v3 = vld [vmem:[#allocation5 + $0x318] sm:$0xff]  ;;  %vm3196_vm0 = vmmov 0   ;;  %vm2029_vm1 = vcmask 261120  }
  0x75   : > { %3163 = vsyncadd (%p3615_p5), [#allocation9], 4294964096  ;;  %772 = vmatprep.mubr.f32.mxu1 %v3195_v0  ;;  %637 = vmatprep.subr.mxu0 %v407_v1  ;;  %v399_v4 = vld [vmem:[#allocation5 + $0x310] sm:$0xff]  ;;  %v393_v5 = vld [vmem:[#allocation5 + $0x2e0] sm:$0xff]  ;;  %vm2149_vm2 = vcmask 523264   ;;  %s3200_s25 = smov 1  }
  0x76   : > { %638 = vmatpush1.msra.mxu0 %v406_v2  ;;  %v392_v6 = vld [vmem:[#allocation5 + $0x2d8] sm:$0xff]  ;;  %v386_v7 = vld [vmem:[#allocation5 + $0x2a8] sm:$0xff]  ;;  %v385_v8 = vld [vmem:[#allocation5 + $0x2a0] sm:$0xff]  ;;  %s3201_s13 = smov 4   ;;  %s3202_s27 = smov 28   ;;  %vm2368_vm10 = vcmask 293888  }
  0x77   : > { %639 = vmatprep.subr.mxu0 %v400_v3  ;;  %v379_v9 = vld [vmem:[#allocation5 + $0x270] sm:$0xff]  ;;  %v378_v10 = vld [vmem:[#allocation5 + $0x268] sm:$0xff]  ;;  %v372_v11 = vld [vmem:[#allocation5 + $0x238] sm:$0xff]  ;;  %s3203_s6 = smov 27   ;;  %s2513_s7 = sshll.u32 %s3383_s30, 4  ;;  %vm2370_vm11 = vcmask 302080  }
  0x78   : > { %640 = vmatpush1.msra.mxu0 %v399_v4  ;;  %v371_v12 = vld [vmem:[#allocation5 + $0x230] sm:$0xff]  ;;  %v365_v13 = vld [vmem:[#allocation5 + $0x200] sm:$0xff]  ;;  %v364_v15 = vld [vmem:[#allocation5 + $0x1f8] sm:$0xff]  ;;  %s296_s8 = scalar_lea.vmem [#allocation11], %s2513_s7  ;;  %s2532_s17 = sshll.u32 %s3256_s24, 8 }
  0x79   : > { %641 = vmatprep.subr.mxu0 %v393_v5  ;;  %v631_v14 = vld [vmem:[#allocation5 + $0xa50] sm:$0xff]  ;;  %v630_v16 = vld [vmem:[#allocation5 + $0xa48] sm:$0xff]  ;;  %v624_v17 = vld [vmem:[#allocation5 + $0xa18] sm:$0xff]  ;;  %s2389_s23 = sshll.u32 %s296_s8, 4  ;;  %s3556_s26 = scalar_lea.hbm %s3598_s5, %s2532_s17  ;;  %s2390_s23 = int_to_ptr.vmem [resolvable:$true] %s2389_s23 }
  0x7a   : > { %642 = vmatpush1.msra.mxu0 %v392_v6  ;;  %708 = vmatprep.subr.mxu1 %v631_v14  ;;  %v358_v18 = vld [vmem:[#allocation5 + $0x1c8] sm:$0xff]  ;;  %v623_v19 = vld [vmem:[#allocation5 + $0xa10] sm:$0xff]  ;;  %v357_v20 = vld [vmem:[#allocation5 + $0x1c0] sm:$0xff]  ;;  %s2375_s29 = scalar_lea.sflag [#allocation4], %s3383_s30  ;;  %s3110_s9 = scalar_lea.vmem %s2390_s23, 256 }
  0x7b   : > { %643 = vmatprep.subr.mxu0 %v386_v7  ;;  %709 = vmatpush1.msra.mxu1 %v630_v16  ;;  %v617_v21 = vld [vmem:[#allocation5 + $0x9e0] sm:$0xff]  ;;  %v616_v22 = vld [vmem:[#allocation5 + $0x9d8] sm:$0xff]  ;;  %v351_v23 = vld [vmem:[#allocation5 + $0x190] sm:$0xff]  ;;  %p3111_p8 = scmp.ne.s32.totalorder %s2390_s23, %s3110_s9  ;;  %p3618_p7 = scmp.ne.s32.totalorder %s3607_s15, 0 }
  0x7c   : > { %644 = vmatpush1.msra.mxu0 %v385_v8  ;;  %710 = vmatprep.subr.mxu1 %v624_v17  ;;  %v610_v24 = vld [vmem:[#allocation5 + $0x9a8] sm:$0xff]  ;;  %v609_v26 = vld [vmem:[#allocation5 + $0x9a0] sm:$0xff]  ;;  %v344_v27 = vld [vmem:[#allocation5 + $0x158] sm:$0xff]  ;;  %s3204_s24 = smov [#allocation11]  }
  0x7d   : > { %645 = vmatprep.subr.mxu0 %v379_v9  ;;  %711 = vmatpush1.msra.mxu1 %v623_v19  ;;  %v350_v25 = vld [vmem:[#allocation5 + $0x188] sm:$0xff]  ;;  %v603_v28 = vld [vmem:[#allocation5 + $0x970] sm:$0xff]  ;;  %v337_v31 = vld [vmem:[#allocation5 + $0x120] sm:$0xff]  ;;  %p3112_p10 = pnand %p3111_p8, %p3618_p7  ;;  %s3114_s10 = sshll.u32 %s3204_s24, 4  ;;  %s3115_s10 = int_to_ptr.vmem [resolvable:$false] %s3114_s10 }
  0x7e   : > { %646 = vmatpush1.msra.mxu0 %v378_v10  ;;  %712 = vmatprep.subr.mxu1 %v617_v21  ;;  %v343_v29 = vld [vmem:[#allocation5 + $0x150] sm:$0xff]  ;;  %v602_v30 = vld [vmem:[#allocation5 + $0x968] sm:$0xff]  ;;  %v596_v32 = vld [vmem:[#allocation5 + $0x938] sm:$0xff]  ;;  %p3117_p12 = scmp.lt.s32.totalorder %s2390_s23, %s3115_s10 }
  0x7f   : > { %647 = vmatprep.subr.mxu0 %v372_v11  ;;  %713 = vmatpush1.msra.mxu1 %v616_v22  ;;  %v336_v33 = vld [vmem:[#allocation5 + $0x118] sm:$0xff]  ;;  %v595_v34 = vld [vmem:[#allocation5 + $0x930] sm:$0xff]  ;;  %v330_v35 = vld [vmem:[#allocation5 + $0xe8] sm:$0xff]  ;;  %p3113_p0 = pneg %p3112_p10 }
  0x80   : > { %648 = vmatpush1.msra.mxu0 %v371_v12  ;;  %714 = vmatprep.subr.mxu1 %v610_v24  ;;  %v589_v36 = vld [vmem:[#allocation5 + $0x900] sm:$0xff]  ;;  %v588_v38 = vld [vmem:[#allocation5 + $0x8f8] sm:$0xff]  ;;  %v323_v39 = vld [vmem:[#allocation5 + $0xb0] sm:$0xff] }
  0x81   : > { %649 = vmatprep.subr.mxu0 %v365_v13  ;;  %715 = vmatpush1.msra.mxu1 %v609_v26  ;;  %v329_v37 = vld [vmem:[#allocation5 + $0xe0] sm:$0xff]  ;;  %v582_v40 = vld [vmem:[#allocation5 + $0x8c8] sm:$0xff]  ;;  %v316_v43 = vld [vmem:[#allocation5 + $0x78] sm:$0xff] }
  0x82   : > { %650 = vmatpush1.msra.mxu0 %v364_v15  ;;  %716 = vmatprep.subr.mxu1 %v603_v28  ;;  %v322_v41 = vld [vmem:[#allocation5 + $0xa8] sm:$0xff]  ;;  %v581_v42 = vld [vmem:[#allocation5 + $0x8c0] sm:$0xff]  ;;  %v575_v44 = vld [vmem:[#allocation5 + $0x890] sm:$0xff] }
  0x83   : > { %651 = vmatprep.subr.mxu0 %v358_v18  ;;  %717 = vmatpush1.msra.mxu1 %v602_v30  ;;  %v315_v45 = vld [vmem:[#allocation5 + $0x70] sm:$0xff]  ;;  %v574_v46 = vld [vmem:[#allocation5 + $0x888] sm:$0xff]  ;;  %v309_v47 = vld [vmem:[#allocation5 + $0x40] sm:$0xff] }
  0x84   : > { %652 = vmatpush1.msra.mxu0 %v357_v20  ;;  %718 = vmatprep.subr.mxu1 %v596_v32  ;;  %v568_v48 = vld [vmem:[#allocation5 + $0x858] sm:$0xff]  ;;  %v567_v50 = vld [vmem:[#allocation5 + $0x850] sm:$0xff]  ;;  %v302_v51 = vld [vmem:[#allocation5 + $0x8] sm:$0xff] }
  0x85   : > { %653 = vmatprep.subr.mxu0 %v351_v23  ;;  %719 = vmatpush1.msra.mxu1 %v595_v34  ;;  %v308_v49 = vld [vmem:[#allocation5 + $0x38] sm:$0xff]  ;;  %v561_v52 = vld [vmem:[#allocation5 + $0x820] sm:$0xff]  ;;  %v519_v55 = vld [vmem:[#allocation5 + $0x6d0] sm:$0xff] }
  0x86   : > { %654 = vmatpush1.msra.mxu0 %v350_v25  ;;  %720 = vmatprep.subr.mxu1 %v589_v36  ;;  %v301_v53 = vld [vmem:[#allocation5] sm:$0xff]  ;;  %v560_v54 = vld [vmem:[#allocation5 + $0x818] sm:$0xff]  ;;  %v554_v56 = vld [vmem:[#allocation5 + $0x7e8] sm:$0xff] }
  0x87   : > { %655 = vmatprep.subr.mxu0 %v344_v27  ;;  %721 = vmatpush1.msra.mxu1 %v588_v38  ;;  %v518_v57 = vld [vmem:[#allocation5 + $0x6c8] sm:$0xff]  ;;  %v553_v58 = vld [vmem:[#allocation5 + $0x7e0] sm:$0xff]  ;;  %v512_v59 = vld [vmem:[#allocation5 + $0x698] sm:$0xff] }
  0x88   : > { %656 = vmatpush1.msra.mxu0 %v343_v29  ;;  %722 = vmatprep.subr.mxu1 %v582_v40  ;;  %v547_v60 = vld [vmem:[#allocation5 + $0x7b0] sm:$0xff]  ;;  %v546_v62 = vld [vmem:[#allocation5 + $0x7a8] sm:$0xff]  ;;  %v505_v63 = vld [vmem:[#allocation5 + $0x660] sm:$0xff] }
  0x89   : > { %657 = vmatprep.subr.mxu0 %v337_v31  ;;  %723 = vmatpush1.msra.mxu1 %v581_v42  ;;  %v511_v61 = vld [vmem:[#allocation5 + $0x690] sm:$0xff]  ;;  %v540_v1 = vld [vmem:[#allocation5 + $0x778] sm:$0xff]  ;;  %v498_v4 = vld [vmem:[#allocation5 + $0x628] sm:$0xff] }
  0x8a   : > { %658 = vmatpush1.msra.mxu0 %v336_v33  ;;  %724 = vmatprep.subr.mxu1 %v575_v44  ;;  %v504_v2 = vld [vmem:[#allocation5 + $0x658] sm:$0xff]  ;;  %v539_v3 = vld [vmem:[#allocation5 + $0x770] sm:$0xff]  ;;  %v533_v5 = vld [vmem:[#allocation5 + $0x740] sm:$0xff] }
  0x8b   : > { %659 = vmatprep.subr.mxu0 %v330_v35  ;;  %725 = vmatpush1.msra.mxu1 %v574_v46  ;;  %v497_v6 = vld [vmem:[#allocation5 + $0x620] sm:$0xff]  ;;  %v532_v7 = vld [vmem:[#allocation5 + $0x738] sm:$0xff]  ;;  %v491_v8 = vld [vmem:[#allocation5 + $0x5f0] sm:$0xff] }
  0x8c   : > { %660 = vmatpush1.msra.mxu0 %v329_v37  ;;  %726 = vmatprep.subr.mxu1 %v568_v48  ;;  %v526_v9 = vld [vmem:[#allocation5 + $0x708] sm:$0xff]  ;;  %v525_v11 = vld [vmem:[#allocation5 + $0x700] sm:$0xff]  ;;  %v484_v12 = vld [vmem:[#allocation5 + $0x5b8] sm:$0xff] }
  0x8d   : > { %661 = vmatprep.subr.mxu0 %v323_v39  ;;  %727 = vmatpush1.msra.mxu1 %v567_v50  ;;  %v490_v10 = vld [vmem:[#allocation5 + $0x5e8] sm:$0xff]  ;;  %v3403_v13 = vld [vmem:[%s3387_s22 + $0x10] sm:$0xff]  ;;  %v477_v16 = vld [vmem:[#allocation5 + $0x580] sm:$0xff] }
  0x8e   : > { %662 = vmatpush1.msra.mxu0 %v322_v41  ;;  %728 = vmatprep.subr.mxu1 %v561_v52  ;;  %v483_v14 = vld [vmem:[#allocation5 + $0x5b0] sm:$0xff]  ;;  %v3406_v15 = vld [vmem:[%s3387_s22 + $0x8] sm:$0xff]  ;;  %v409_v17 = vld [vmem:[#allocation5 + $0x360] sm:$0xff] }
  0x8f   : > { %663 = vmatprep.subr.mxu0 %v316_v43  ;;  %729 = vmatpush1.msra.mxu1 %v560_v54  ;;  %v476_v18 = vld [vmem:[#allocation5 + $0x578] sm:$0xff]  ;;  %v470_v20 = vld [vmem:[#allocation5 + $0x548] sm:$0xff]  ;;  %v469_v22 = vld [vmem:[#allocation5 + $0x540] sm:$0xff] }
  0x90   : > { %664 = vmatpush1.msra.mxu0 %v315_v45  ;;  %730 = vmatprep.subr.mxu1 %v554_v56  ;;  %v408_v19 = vld [vmem:[#allocation5 + $0x358] sm:$0xff]  ;;  %v402_v21 = vld [vmem:[#allocation5 + $0x328] sm:$0xff]  ;;  %v401_v23 = vld [vmem:[#allocation5 + $0x320] sm:$0xff] }
  0x91   : > { %665 = vmatprep.subr.mxu0 %v309_v47  ;;  %731 = vmatpush1.msra.mxu1 %v553_v58  ;;  %v463_v24 = vld [vmem:[#allocation5 + $0x510] sm:$0xff]  ;;  %v462_v26 = vld [vmem:[#allocation5 + $0x508] sm:$0xff]  ;;  %v456_v28 = vld [vmem:[#allocation5 + $0x4d8] sm:$0xff] }
  0x92   : > { %666 = vmatpush1.msra.mxu0 %v308_v49  ;;  %732 = vmatprep.subr.mxu1 %v547_v60  ;;  %v395_v25 = vld [vmem:[#allocation5 + $0x2f0] sm:$0xff]  ;;  %v394_v27 = vld [vmem:[#allocation5 + $0x2e8] sm:$0xff]  ;;  %v388_v29 = vld [vmem:[#allocation5 + $0x2b8] sm:$0xff] }
  0x93   : > { %667 = vmatprep.subr.mxu0 %v302_v51  ;;  %733 = vmatpush1.msra.mxu1 %v546_v62  ;;  %v455_v30 = vld [vmem:[#allocation5 + $0x4d0] sm:$0xff]  ;;  %v449_v32 = vld [vmem:[#allocation5 + $0x4a0] sm:$0xff]  ;;  %v448_v34 = vld [vmem:[#allocation5 + $0x498] sm:$0xff] }
  0x94   : > { %668 = vmatpush1.msra.mxu0 %v301_v53  ;;  %734 = vmatprep.subr.mxu1 %v540_v1  ;;  %v387_v31 = vld [vmem:[#allocation5 + $0x2b0] sm:$0xff]  ;;  %v381_v33 = vld [vmem:[#allocation5 + $0x280] sm:$0xff]  ;;  %v380_v35 = vld [vmem:[#allocation5 + $0x278] sm:$0xff] }
  0x95   : > { %669 = vmatprep.subr.mxu0 %v519_v55  ;;  %735 = vmatpush1.msra.mxu1 %v539_v3  ;;  %v442_v36 = vld [vmem:[#allocation5 + $0x468] sm:$0xff]  ;;  %v441_v38 = vld [vmem:[#allocation5 + $0x460] sm:$0xff]  ;;  %v435_v40 = vld [vmem:[#allocation5 + $0x430] sm:$0xff] }
  0x96   : > { %670 = vmatpush2.msra.mxu0 %v518_v57  ;;  %736 = vmatprep.subr.mxu1 %v533_v5  ;;  %v374_v37 = vld [vmem:[#allocation5 + $0x248] sm:$0xff]  ;;  %v373_v39 = vld [vmem:[#allocation5 + $0x240] sm:$0xff]  ;;  %v367_v41 = vld [vmem:[#allocation5 + $0x210] sm:$0xff] }
  0x97   : > { %671 = vmatprep.subr.mxu0 %v512_v59  ;;  %737 = vmatpush1.msra.mxu1 %v532_v7  ;;  %v434_v42 = vld [vmem:[#allocation5 + $0x428] sm:$0xff]  ;;  %v428_v44 = vld [vmem:[#allocation5 + $0x3f8] sm:$0xff]  ;;  %v427_v46 = vld [vmem:[#allocation5 + $0x3f0] sm:$0xff] }
  0x98   : > { %672 = vmatpush2.msra.mxu0 %v511_v61  ;;  %738 = vmatprep.subr.mxu1 %v526_v9  ;;  %v366_v43 = vld [vmem:[#allocation5 + $0x208] sm:$0xff]  ;;  %v360_v45 = vld [vmem:[#allocation5 + $0x1d8] sm:$0xff]  ;;  %v359_v47 = vld [vmem:[#allocation5 + $0x1d0] sm:$0xff] }
  0x99   : > { %673 = vmatprep.subr.mxu0 %v505_v63  ;;  %739 = vmatpush1.msra.mxu1 %v525_v11  ;;  %v421_v48 = vld [vmem:[#allocation5 + $0x3c0] sm:$0xff]  ;;  %v420_v50 = vld [vmem:[#allocation5 + $0x3b8] sm:$0xff]  ;;  %v414_v52 = vld [vmem:[#allocation5 + $0x388] sm:$0xff] }
  0x9a   : > { %674 = vmatpush2.msra.mxu0 %v504_v2  ;;  %773 = vmatmul.mubr.f32.vlgmr.msra.gmra.mxu1 %v3403_v13  ;;  %v353_v49 = vld [vmem:[#allocation5 + $0x1a0] sm:$0xff]  ;;  %v352_v51 = vld [vmem:[#allocation5 + $0x198] sm:$0xff]  ;;  %v346_v53 = vld [vmem:[#allocation5 + $0x168] sm:$0xff] }
  0x9b   : > { %675 = vmatprep.subr.mxu0 %v498_v4  ;;  %701 = vmatprep.mubr.f32.mxu0 %v3406_v15  ;;  %v413_v54 = vld [vmem:[#allocation5 + $0x380] sm:$0xff]  ;;  %v339_v57 = vld [vmem:[#allocation5 + $0x130] sm:$0xff]  ;;  %v338_v58 = vld [vmem:[#allocation5 + $0x128] sm:$0xff] }
  0x9c   : > { %676 = vmatpush2.msra.mxu0 %v497_v6  ;;  %779 = vmatprep.subr.mxu1 %v409_v17  ;;  %v345_v55 = vld [vmem:[#allocation5 + $0x160] sm:$0xff]  ;;  %v332_v60 = vld [vmem:[#allocation5 + $0xf8] sm:$0xff]  ;;  %v331_v62 = vld [vmem:[#allocation5 + $0xf0] sm:$0xff] }
  0x9d   : > { %677 = vmatprep.subr.mxu0 %v491_v8  ;;  %780 = vmatpush1.msra.mxu1 %v408_v19  ;;  %v3411_v56 = vld [vmem:[%s3387_s22] sm:$0xff]  ;;  %v632_v61 = vld [vmem:[#allocation5 + $0xa58] sm:$0xff]  ;;  %v626_v63 = vld [vmem:[#allocation5 + $0xa28] sm:$0xff] }
  0x9e   : > { %678 = vmatpush2.msra.mxu0 %v490_v10  ;;  %781 = vmatprep.subr.mxu1 %v402_v21  ;;  %v633_v59 = vld [vmem:[#allocation5 + $0xa60] sm:$0xff]  ;;  %v324_v3 = vld [vmem:[#allocation5 + $0xb8] sm:$0xff]  ;;  %v619_v4 = vld [vmem:[#allocation5 + $0x9f0] sm:$0xff] }
  0x9f   : > { %679 = vmatprep.subr.mxu0 %v484_v12  ;;  %782 = vmatpush1.msra.mxu1 %v401_v23  ;;  %v325_v1 = vld [vmem:[#allocation5 + $0xc0] sm:$0xff]  ;;  %v318_v5 = vld [vmem:[#allocation5 + $0x88] sm:$0xff]  ;;  %v612_v8 = vld [vmem:[#allocation5 + $0x9b8] sm:$0xff] }
  0xa0   : > { %680 = vmatpush2.msra.mxu0 %v483_v14  ;;  %783 = vmatprep.subr.mxu1 %v395_v25  ;;  %v625_v2 = vld [vmem:[#allocation5 + $0xa20] sm:$0xff]  ;;  %v618_v6 = vld [vmem:[#allocation5 + $0x9e8] sm:$0xff]  ;;  %v311_v9 = vld [vmem:[#allocation5 + $0x50] sm:$0xff] }
  0xa1   : > { %681 = vmatprep.subr.mxu0 %v477_v16  ;;  %784 = vmatpush1.msra.mxu1 %v394_v27  ;;  %v317_v7 = vld [vmem:[#allocation5 + $0x80] sm:$0xff]  ;;  %v611_v10 = vld [vmem:[#allocation5 + $0x9b0] sm:$0xff]  ;;  %v310_v11 = vld [vmem:[#allocation5 + $0x48] sm:$0xff] }
  0xa2   : > { %682 = vmatpush2.msra.mxu0 %v476_v18  ;;  %785 = vmatprep.subr.mxu1 %v388_v29  ;;  %v605_v12 = vld [vmem:[#allocation5 + $0x980] sm:$0xff]  ;;  %v304_v14 = vld [vmem:[#allocation5 + $0x18] sm:$0xff]  ;;  %v303_v17 = vld [vmem:[#allocation5 + $0x10] sm:$0xff] }
  0xa3   : > { %683 = vmatprep.subr.mxu0 %v470_v20  ;;  %786 = vmatpush1.msra.mxu1 %v387_v31  ;;  %v604_v16 = vld [vmem:[#allocation5 + $0x978] sm:$0xff]  ;;  %v598_v18 = vld [vmem:[#allocation5 + $0x948] sm:$0xff]  ;;  %v521_v19 = vld [vmem:[#allocation5 + $0x6e0] sm:$0xff] }
  0xa4   : > { %684 = vmatpush2.msra.mxu0 %v469_v22  ;;  %787 = vmatprep.subr.mxu1 %v381_v33  ;;  %v597_v20 = vld [vmem:[#allocation5 + $0x940] sm:$0xff]  ;;  %v520_v21 = vld [vmem:[#allocation5 + $0x6d8] sm:$0xff]  ;;  %v591_v22 = vld [vmem:[#allocation5 + $0x910] sm:$0xff] }
  0xa5   : > { %685 = vmatprep.subr.mxu0 %v463_v24  ;;  %788 = vmatpush1.msra.mxu1 %v380_v35  ;;  %v514_v23 = vld [vmem:[#allocation5 + $0x6a8] sm:$0xff]  ;;  %v513_v25 = vld [vmem:[#allocation5 + $0x6a0] sm:$0xff]  ;;  %v507_v27 = vld [vmem:[#allocation5 + $0x670] sm:$0xff] }
  0xa6   : > { %686 = vmatpush2.msra.mxu0 %v462_v26  ;;  %789 = vmatprep.subr.mxu1 %v374_v37  ;;  %v590_v24 = vld [vmem:[#allocation5 + $0x908] sm:$0xff]  ;;  %v584_v26 = vld [vmem:[#allocation5 + $0x8d8] sm:$0xff]  ;;  %v499_v33 = vld [vmem:[#allocation5 + $0x630] sm:$0xff] }
  0xa7   : > { %687 = vmatprep.subr.mxu0 %v456_v28  ;;  %790 = vmatpush1.msra.mxu1 %v373_v39  ;;  %v583_v28 = vld [vmem:[#allocation5 + $0x8d0] sm:$0xff]  ;;  %v506_v29 = vld [vmem:[#allocation5 + $0x668] sm:$0xff]  ;;  %v500_v31 = vld [vmem:[#allocation5 + $0x638] sm:$0xff] }
  0xa8   : > { %688 = vmatpush2.msra.mxu0 %v455_v30  ;;  %791 = vmatprep.subr.mxu1 %v367_v41  ;;  %v577_v30 = vld [vmem:[#allocation5 + $0x8a0] sm:$0xff]  ;;  %v492_v37 = vld [vmem:[#allocation5 + $0x5f8] sm:$0xff]  ;;  %v486_v39 = vld [vmem:[#allocation5 + $0x5c8] sm:$0xff] }
  0xa9   : > { %689 = vmatprep.subr.mxu0 %v449_v32  ;;  %792 = vmatpush1.msra.mxu1 %v366_v43  ;;  %v576_v32 = vld [vmem:[#allocation5 + $0x898] sm:$0xff]  ;;  %v493_v35 = vld [vmem:[#allocation5 + $0x600] sm:$0xff]  ;;  %v479_v43 = vld [vmem:[#allocation5 + $0x590] sm:$0xff] }
  0xaa   : > { %690 = vmatpush2.msra.mxu0 %v448_v34  ;;  %793 = vmatprep.subr.mxu1 %v360_v45  ;;  %v570_v34 = vld [vmem:[#allocation5 + $0x868] sm:$0xff]  ;;  %v485_v41 = vld [vmem:[#allocation5 + $0x5c0] sm:$0xff] }
  0xab   : > { %691 = vmatprep.subr.mxu0 %v442_v36  ;;  %794 = vmatpush1.msra.mxu1 %v359_v47  ;;  %v569_v36 = vld [vmem:[#allocation5 + $0x860] sm:$0xff]  ;;  %v478_v45 = vld [vmem:[#allocation5 + $0x588] sm:$0xff]  ;;  %v472_v47 = vld [vmem:[#allocation5 + $0x558] sm:$0xff] }
  0xac   : > { %692 = vmatpush2.msra.mxu0 %v441_v38  ;;  %795 = vmatprep.subr.mxu1 %v353_v49  ;;  %v563_v38 = vld [vmem:[#allocation5 + $0x830] sm:$0xff] }
  0xad   : > { %693 = vmatprep.subr.mxu0 %v435_v40  ;;  %796 = vmatpush1.msra.mxu1 %v352_v51  ;;  %v562_v40 = vld [vmem:[#allocation5 + $0x828] sm:$0xff]  ;;  %v471_v49 = vld [vmem:[#allocation5 + $0x550] sm:$0xff]  ;;  %v465_v51 = vld [vmem:[#allocation5 + $0x520] sm:$0xff] }
  0xae   : > { %694 = vmatpush2.msra.mxu0 %v434_v42  ;;  %797 = vmatprep.subr.mxu1 %v346_v53  ;;  %v556_v42 = vld [vmem:[#allocation5 + $0x7f8] sm:$0xff] }
  0xaf   : > { %695 = vmatprep.subr.mxu0 %v428_v44  ;;  %798 = vmatpush1.msra.mxu1 %v345_v55  ;;  %v555_v44 = vld [vmem:[#allocation5 + $0x7f0] sm:$0xff]  ;;  %v464_v53 = vld [vmem:[#allocation5 + $0x518] sm:$0xff]  ;;  %v458_v55 = vld [vmem:[#allocation5 + $0x4e8] sm:$0xff] }
  0xb0   : > { %696 = vmatpush2.msra.mxu0 %v427_v46  ;;  %799 = vmatprep.subr.mxu1 %v339_v57  ;;  %v549_v46 = vld [vmem:[#allocation5 + $0x7c0] sm:$0xff]  ;;  %v534_v57 = vld [vmem:[#allocation5 + $0x748] sm:$0xff] }
  0xb1   : > { %697 = vmatprep.subr.mxu0 %v421_v48  ;;  %800 = vmatpush1.msra.mxu1 %v338_v58  ;;  %v548_v48 = vld [vmem:[#allocation5 + $0x7b8] sm:$0xff]  ;;  %v457_v58 = vld [vmem:[#allocation5 + $0x4e0] sm:$0xff] }
  0xb2   : > { %698 = vmatpush2.msra.mxu0 %v420_v50  ;;  %801 = vmatprep.subr.mxu1 %v332_v60  ;;  %v542_v50 = vld [vmem:[#allocation5 + $0x788] sm:$0xff]  ;;  %v451_v60 = vld [vmem:[#allocation5 + $0x4b0] sm:$0xff] }
  0xb3   : > { %699 = vmatprep.subr.mxu0 %v414_v52  ;;  %802 = vmatpush1.msra.mxu1 %v331_v62  ;;  %v541_v52 = vld [vmem:[#allocation5 + $0x780] sm:$0xff]  ;;  %v450_v62 = vld [vmem:[#allocation5 + $0x4a8] sm:$0xff] }
  0xb4   : > { %700 = vmatpush2.msra.mxu0 %v413_v54  ;;  %803 = vmatprep.subr.mxu1 %v325_v1  ;;  %v535_v54 = vld [vmem:[#allocation5 + $0x750] sm:$0xff] }
  0xb5   : > { %702 = vmatmul.mubr.f32.vlgmr.msra.gmra.mxu0 %v3411_v56  ;;  %850 = vmatprep.subr.mxu0 %v633_v59  ;;  %v528_v59 = vld [vmem:[#allocation5 + $0x718] sm:$0xff]  ;;  %v411_v1 = vld [vmem:[#allocation5 + $0x370] sm:$0xff] }
  0xb6   : > { %851 = vmatpush1.msra.mxu0 %v632_v61  ;;  %804 = vmatpush1.msra.mxu1 %v324_v3  ;;  %v527_v61 = vld [vmem:[#allocation5 + $0x710] sm:$0xff]  ;;  %v437_v3 = vld [vmem:[#allocation5 + $0x440] sm:$0xff] }
  0xb7   : > { %852 = vmatprep.subr.mxu0 %v626_v63  ;;  %805 = vmatprep.subr.mxu1 %v318_v5  ;;  %v444_v63 = vld [vmem:[#allocation5 + $0x478] sm:$0xff] }
  0xb8   : > { %853 = vmatpush1.msra.mxu0 %v625_v2  ;;  %806 = vmatpush1.msra.mxu1 %v317_v7  ;;  %v443_v2 = vld [vmem:[#allocation5 + $0x470] sm:$0xff]  ;;  %v436_v5 = vld [vmem:[#allocation5 + $0x438] sm:$0xff]  ;;  %v430_v7 = vld [vmem:[#allocation5 + $0x408] sm:$0xff] }
  0xb9   : > { %854 = vmatprep.subr.mxu0 %v619_v4  ;;  %807 = vmatprep.subr.mxu1 %v311_v9  ;;  %v410_v4 = vld [vmem:[#allocation5 + $0x368] sm:$0xff]  ;;  %v403_v9 = vld [vmem:[#allocation5 + $0x330] sm:$0xff] }
  0xba   : > { %855 = vmatpush1.msra.mxu0 %v618_v6  ;;  %808 = vmatpush1.msra.mxu1 %v310_v11  ;;  %v404_v6 = vld [vmem:[#allocation5 + $0x338] sm:$0xff]  ;;  %v397_v11 = vld [vmem:[#allocation5 + $0x300] sm:$0xff] }
  0xbb   : > { %856 = vmatprep.subr.mxu0 %v612_v8  ;;  %809 = vmatprep.subr.mxu1 %v304_v14  ;;  %v429_v8 = vld [vmem:[#allocation5 + $0x400] sm:$0xff]  ;;  %v396_v14 = vld [vmem:[#allocation5 + $0x2f8] sm:$0xff] }
  0xbc   : > { %857 = vmatpush1.msra.mxu0 %v611_v10  ;;  %810 = vmatpush1.msra.mxu1 %v303_v17  ;;  %v423_v10 = vld [vmem:[#allocation5 + $0x3d0] sm:$0xff]  ;;  %v390_v17 = vld [vmem:[#allocation5 + $0x2c8] sm:$0xff] }
  0xbd   : > { %858 = vmatprep.subr.mxu0 %v605_v12  ;;  %811 = vmatprep.subr.mxu1 %v521_v19  ;;  %v422_v12 = vld [vmem:[#allocation5 + $0x3c8] sm:$0xff]  ;;  %v389_v19 = vld [vmem:[#allocation5 + $0x2c0] sm:$0xff] }
  0xbe   : > { %859 = vmatpush1.msra.mxu0 %v604_v16  ;;  %812 = vmatpush2.msra.mxu1 %v520_v21  ;;  %v416_v16 = vld [vmem:[#allocation5 + $0x398] sm:$0xff]  ;;  %v382_v21 = vld [vmem:[#allocation5 + $0x288] sm:$0xff] }
  0xbf   : > { %860 = vmatprep.subr.mxu0 %v598_v18  ;;  %813 = vmatprep.subr.mxu1 %v514_v23  ;;  %v415_v18 = vld [vmem:[#allocation5 + $0x390] sm:$0xff]  ;;  %v376_v23 = vld [vmem:[#allocation5 + $0x258] sm:$0xff] }
  0xc0   : > { %861 = vmatpush1.msra.mxu0 %v597_v20  ;;  %814 = vmatpush2.msra.mxu1 %v513_v25  ;;  %v383_v20 = vld [vmem:[#allocation5 + $0x290] sm:$0xff] }
  0xc1   : > { %862 = vmatprep.subr.mxu0 %v591_v22  ;;  %815 = vmatprep.subr.mxu1 %v507_v27  ;;  %v635_v22 = vld [vmem:[#allocation5 + $0xa70] sm:$0xff]  ;;  %v369_v27 = vld [vmem:[#allocation5 + $0x220] sm:$0xff] }
  0xc2   : > { %863 = vmatpush1.msra.mxu0 %v590_v24  ;;  %816 = vmatpush2.msra.mxu1 %v506_v29  ;;  %v634_v24 = vld [vmem:[#allocation5 + $0xa68] sm:$0xff]  ;;  %v375_v25 = vld [vmem:[#allocation5 + $0x250] sm:$0xff]  ;;  %v368_v29 = vld [vmem:[#allocation5 + $0x218] sm:$0xff] }
  0xc3   : > { %864 = vmatprep.subr.mxu0 %v584_v26  ;;  %817 = vmatprep.subr.mxu1 %v500_v31  ;;  %v628_v26 = vld [vmem:[#allocation5 + $0xa38] sm:$0xff]  ;;  %v362_v31 = vld [vmem:[#allocation5 + $0x1e8] sm:$0xff] }
  0xc4   : > { %865 = vmatpush1.msra.mxu0 %v583_v28  ;;  %818 = vmatpush2.msra.mxu1 %v499_v33  ;;  %v627_v28 = vld [vmem:[#allocation5 + $0xa30] sm:$0xff]  ;;  %v361_v33 = vld [vmem:[#allocation5 + $0x1e0] sm:$0xff] }
  0xc5   : > { %866 = vmatprep.subr.mxu0 %v577_v30  ;;  %819 = vmatprep.subr.mxu1 %v493_v35  ;;  %v621_v30 = vld [vmem:[#allocation5 + $0xa00] sm:$0xff]  ;;  %v355_v35 = vld [vmem:[#allocation5 + $0x1b0] sm:$0xff] }
  0xc6   : > { %867 = vmatpush1.msra.mxu0 %v576_v32  ;;  %820 = vmatpush2.msra.mxu1 %v492_v37  ;;  %v620_v32 = vld [vmem:[#allocation5 + $0x9f8] sm:$0xff]  ;;  %v354_v37 = vld [vmem:[#allocation5 + $0x1a8] sm:$0xff] }
  0xc7   : > { %868 = vmatprep.subr.mxu0 %v570_v34  ;;  %821 = vmatprep.subr.mxu1 %v486_v39  ;;  %v614_v34 = vld [vmem:[#allocation5 + $0x9c8] sm:$0xff]  ;;  %v348_v39 = vld [vmem:[#allocation5 + $0x178] sm:$0xff] }
  0xc8   : > { %869 = vmatpush1.msra.mxu0 %v569_v36  ;;  %822 = vmatpush2.msra.mxu1 %v485_v41  ;;  %v613_v36 = vld [vmem:[#allocation5 + $0x9c0] sm:$0xff]  ;;  %v347_v41 = vld [vmem:[#allocation5 + $0x170] sm:$0xff] }
  0xc9   : > { %870 = vmatprep.subr.mxu0 %v563_v38  ;;  %823 = vmatprep.subr.mxu1 %v479_v43  ;;  %v607_v38 = vld [vmem:[#allocation5 + $0x990] sm:$0xff]  ;;  %v341_v43 = vld [vmem:[#allocation5 + $0x140] sm:$0xff] }
  0xca   : > { %871 = vmatpush1.msra.mxu0 %v562_v40  ;;  %824 = vmatpush2.msra.mxu1 %v478_v45  ;;  %v606_v40 = vld [vmem:[#allocation5 + $0x988] sm:$0xff]  ;;  %v340_v45 = vld [vmem:[#allocation5 + $0x138] sm:$0xff] }
  0xcb   : > { %872 = vmatprep.subr.mxu0 %v556_v42  ;;  %825 = vmatprep.subr.mxu1 %v472_v47  ;;  %v600_v42 = vld [vmem:[#allocation5 + $0x958] sm:$0xff]  ;;  %v334_v47 = vld [vmem:[#allocation5 + $0x108] sm:$0xff] }
  0xcc   : > { %873 = vmatpush1.msra.mxu0 %v555_v44  ;;  %826 = vmatpush2.msra.mxu1 %v471_v49  ;;  %v599_v44 = vld [vmem:[#allocation5 + $0x950] sm:$0xff]  ;;  %v333_v49 = vld [vmem:[#allocation5 + $0x100] sm:$0xff] }
  0xcd   : > { %874 = vmatprep.subr.mxu0 %v549_v46  ;;  %827 = vmatprep.subr.mxu1 %v465_v51  ;;  %v593_v46 = vld [vmem:[#allocation5 + $0x920] sm:$0xff]  ;;  %v327_v51 = vld [vmem:[#allocation5 + $0xd0] sm:$0xff] }
  0xce   : > { %875 = vmatpush1.msra.mxu0 %v548_v48  ;;  %828 = vmatpush2.msra.mxu1 %v464_v53  ;;  %v592_v48 = vld [vmem:[#allocation5 + $0x918] sm:$0xff]  ;;  %v326_v53 = vld [vmem:[#allocation5 + $0xc8] sm:$0xff] }
  0xcf   : > { %876 = vmatprep.subr.mxu0 %v542_v50  ;;  %829 = vmatprep.subr.mxu1 %v458_v55  ;;  %v586_v50 = vld [vmem:[#allocation5 + $0x8e8] sm:$0xff]  ;;  %v320_v55 = vld [vmem:[#allocation5 + $0x98] sm:$0xff] }
  0xd0   : > { %877 = vmatpush1.msra.mxu0 %v541_v52  ;;  %830 = vmatpush2.msra.mxu1 %v457_v58  ;;  %v585_v52 = vld [vmem:[#allocation5 + $0x8e0] sm:$0xff]  ;;  %v319_v58 = vld [vmem:[#allocation5 + $0x90] sm:$0xff] }
  0xd1   : > { %878 = vmatprep.subr.mxu0 %v535_v54  ;;  %831 = vmatprep.subr.mxu1 %v451_v60  ;;  %v579_v54 = vld [vmem:[#allocation5 + $0x8b0] sm:$0xff]  ;;  %v313_v60 = vld [vmem:[#allocation5 + $0x60] sm:$0xff] }
  0xd2   : > { %879 = vmatpush1.msra.mxu0 %v534_v57  ;;  %832 = vmatpush2.msra.mxu1 %v450_v62  ;;  %v578_v57 = vld [vmem:[#allocation5 + $0x8a8] sm:$0xff]  ;;  %v312_v62 = vld [vmem:[#allocation5 + $0x58] sm:$0xff] }
  0xd3   : > { %880 = vmatprep.subr.mxu0 %v528_v59  ;;  %914 = vmatprep.mubr.f32.mxu0 %v3195_v0  ;;  %v572_v59 = vld [vmem:[#allocation5 + $0x878] sm:$0xff] }
  0xd4   : > { %881 = vmatpush1.msra.mxu0 %v527_v61  ;;  %833 = vmatprep.subr.mxu1 %v444_v63  ;;  %v571_v61 = vld [vmem:[#allocation5 + $0x870] sm:$0xff]  ;;  %v565_v63 = vld [vmem:[#allocation5 + $0x840] sm:$0xff] }
  0xd5   : > { %921 = vmatprep.subr.mxu0 %v411_v1  ;;  %834 = vmatpush2.msra.mxu1 %v443_v2  ;;  %v306_v1 = vld [vmem:[#allocation5 + $0x28] sm:$0xff]  ;;  %v564_v2 = vld [vmem:[#allocation5 + $0x838] sm:$0xff] }
  0xd6   : > { %915 = vmatmul.mubr.f32.vlgmr.msra.gmra.mxu0 %v3403_v13  ;;  %835 = vmatprep.subr.mxu1 %v437_v3  ;;  %v305_v3 = vld [vmem:[#allocation5 + $0x20] sm:$0xff] }
  0xd7   : > { %922 = vmatpush1.msra.mxu0 %v410_v4  ;;  %836 = vmatpush2.msra.mxu1 %v436_v5  ;;  %v558_v4 = vld [vmem:[#allocation5 + $0x808] sm:$0xff]  ;;  %v523_v5 = vld [vmem:[#allocation5 + $0x6f0] sm:$0xff] }
  0xd8   : > { %923 = vmatprep.subr.mxu0 %v404_v6  ;;  %837 = vmatprep.subr.mxu1 %v430_v7  ;;  %v557_v6 = vld [vmem:[#allocation5 + $0x800] sm:$0xff]  ;;  %v522_v7 = vld [vmem:[#allocation5 + $0x6e8] sm:$0xff] }
  0xd9   : > { %843 = vmatprep.mubr.f32.mxu1 %v3406_v15  ;;  %838 = vmatpush2.msra.mxu1 %v429_v8  ;;  %v551_v8 = vld [vmem:[#allocation5 + $0x7d0] sm:$0xff] }
  0xda   : > { %924 = vmatpush1.msra.mxu0 %v403_v9  ;;  %839 = vmatprep.subr.mxu1 %v423_v10  ;;  %v516_v9 = vld [vmem:[#allocation5 + $0x6b8] sm:$0xff]  ;;  %v550_v10 = vld [vmem:[#allocation5 + $0x7c8] sm:$0xff] }
  0xdb   : > { %925 = vmatprep.subr.mxu0 %v397_v11  ;;  %840 = vmatpush2.msra.mxu1 %v422_v12  ;;  %v515_v11 = vld [vmem:[#allocation5 + $0x6b0] sm:$0xff]  ;;  %v544_v12 = vld [vmem:[#allocation5 + $0x798] sm:$0xff] }
  0xdc   : > { %926 = vmatpush1.msra.mxu0 %v396_v14  ;;  %841 = vmatprep.subr.mxu1 %v416_v16  ;;  %v509_v14 = vld [vmem:[#allocation5 + $0x680] sm:$0xff]  ;;  %v543_v16 = vld [vmem:[#allocation5 + $0x790] sm:$0xff] }
  0xdd   : > { %927 = vmatprep.subr.mxu0 %v390_v17  ;;  %842 = vmatpush2.msra.mxu1 %v415_v18  ;;  %v508_v17 = vld [vmem:[#allocation5 + $0x678] sm:$0xff]  ;;  %v537_v18 = vld [vmem:[#allocation5 + $0x760] sm:$0xff] }
  0xde   : > { %928 = vmatpush1.msra.mxu0 %v389_v19  ;;  %844 = vmatmul.mubr.f32.vlgmr.msra.gmra.mxu1 %v3411_v56  ;;  %v502_v19 = vld [vmem:[#allocation5 + $0x648] sm:$0xff] }
  0xdf   : > { %929 = vmatprep.subr.mxu0 %v383_v20  ;;  %992 = vmatprep.subr.mxu1 %v635_v22  ;;  %v536_v20 = vld [vmem:[#allocation5 + $0x758] sm:$0xff]  ;;  %v530_v22 = vld [vmem:[#allocation5 + $0x728] sm:$0xff] }
  0xe0   : > { %930 = vmatpush1.msra.mxu0 %v382_v21  ;;  %993 = vmatpush1.msra.mxu1 %v634_v24  ;;  %v501_v21 = vld [vmem:[#allocation5 + $0x640] sm:$0xff]  ;;  %v494_v24 = vld [vmem:[#allocation5 + $0x608] sm:$0xff] }
  0xe1   : > { %931 = vmatprep.subr.mxu0 %v376_v23  ;;  %994 = vmatprep.subr.mxu1 %v628_v26  ;;  %v495_v23 = vld [vmem:[#allocation5 + $0x610] sm:$0xff]  ;;  %v488_v26 = vld [vmem:[#allocation5 + $0x5d8] sm:$0xff] }
  0xe2   : > { %932 = vmatpush1.msra.mxu0 %v375_v25  ;;  %995 = vmatpush1.msra.mxu1 %v627_v28  ;;  %v529_v25 = vld [vmem:[#allocation5 + $0x720] sm:$0xff] }
  0xe3   : > { %933 = vmatprep.subr.mxu0 %v369_v27  ;;  %996 = vmatprep.subr.mxu1 %v621_v30  ;;  %v487_v27 = vld [vmem:[#allocation5 + $0x5d0] sm:$0xff]  ;;  %v481_v28 = vld [vmem:[#allocation5 + $0x5a0] sm:$0xff]  ;;  %v480_v30 = vld [vmem:[#allocation5 + $0x598] sm:$0xff] }
  0xe4   : > { %934 = vmatpush1.msra.mxu0 %v368_v29  ;;  %997 = vmatpush1.msra.mxu1 %v620_v32  ;;  %v524_v29 = vld [vmem:[#allocation5 + $0x6f8] sm:$0xff]  ;;  %v474_v32 = vld [vmem:[#allocation5 + $0x568] sm:$0xff] }
  0xe5   : > { %935 = vmatprep.subr.mxu0 %v362_v31  ;;  %998 = vmatprep.subr.mxu1 %v614_v34  ;;  %v412_v31 = vld [vmem:[#allocation5 + $0x378] sm:$0xff]  ;;  %v473_v34 = vld [vmem:[#allocation5 + $0x560] sm:$0xff] }
  0xe6   : > { %936 = vmatpush1.msra.mxu0 %v361_v33  ;;  %999 = vmatpush1.msra.mxu1 %v613_v36  ;;  %v517_v33 = vld [vmem:[#allocation5 + $0x6c0] sm:$0xff]  ;;  %v510_v36 = vld [vmem:[#allocation5 + $0x688] sm:$0xff] }
  0xe7   : > { %937 = vmatprep.subr.mxu0 %v355_v35  ;;  %1000 = vmatprep.subr.mxu1 %v607_v38  ;;  %v405_v35 = vld [vmem:[#allocation5 + $0x340] sm:$0xff]  ;;  %v398_v38 = vld [vmem:[#allocation5 + $0x308] sm:$0xff] }
  0xe8   : > { %938 = vmatpush1.msra.mxu0 %v354_v37  ;;  %1001 = vmatpush1.msra.mxu1 %v606_v40  ;;  %v466_v37 = vld [vmem:[#allocation5 + $0x528] sm:$0xff]  ;;  %v503_v40 = vld [vmem:[#allocation5 + $0x650] sm:$0xff] }
  0xe9   : > { %939 = vmatprep.subr.mxu0 %v348_v39  ;;  %1002 = vmatprep.subr.mxu1 %v600_v42  ;;  %v460_v39 = vld [vmem:[#allocation5 + $0x4f8] sm:$0xff]  ;;  %v453_v42 = vld [vmem:[#allocation5 + $0x4c0] sm:$0xff] }
  0xea   : > { %940 = vmatpush1.msra.mxu0 %v347_v41  ;;  %1003 = vmatpush1.msra.mxu1 %v599_v44  ;;  %v459_v41 = vld [vmem:[#allocation5 + $0x4f0] sm:$0xff]  ;;  %v452_v44 = vld [vmem:[#allocation5 + $0x4b8] sm:$0xff] }
  0xeb   : > { %941 = vmatprep.subr.mxu0 %v341_v43  ;;  %1004 = vmatprep.subr.mxu1 %v593_v46  ;;  %v496_v43 = vld [vmem:[#allocation5 + $0x618] sm:$0xff]  ;;  %v446_v46 = vld [vmem:[#allocation5 + $0x488] sm:$0xff] }
  0xec   : > { %942 = vmatpush1.msra.mxu0 %v340_v45  ;;  %1005 = vmatpush1.msra.mxu1 %v592_v48  ;;  %v384_v45 = vld [vmem:[#allocation5 + $0x298] sm:$0xff]  ;;  %v445_v48 = vld [vmem:[#allocation5 + $0x480] sm:$0xff] }
  0xed   : > { %943 = vmatprep.subr.mxu0 %v334_v47  ;;  %1006 = vmatprep.subr.mxu1 %v586_v50  ;;  %v489_v47 = vld [vmem:[#allocation5 + $0x5e0] sm:$0xff]  ;;  %v439_v50 = vld [vmem:[#allocation5 + $0x450] sm:$0xff] }
  0xee   : > { %944 = vmatpush1.msra.mxu0 %v333_v49  ;;  %1007 = vmatpush1.msra.mxu1 %v585_v52  ;;  %v377_v49 = vld [vmem:[#allocation5 + $0x260] sm:$0xff]  ;;  %v438_v52 = vld [vmem:[#allocation5 + $0x448] sm:$0xff] }
  0xef   : > { %945 = vmatprep.subr.mxu0 %v327_v51  ;;  %1008 = vmatprep.subr.mxu1 %v579_v54  ;;  %v482_v51 = vld [vmem:[#allocation5 + $0x5a8] sm:$0xff]  ;;  %v432_v54 = vld [vmem:[#allocation5 + $0x418] sm:$0xff] }
  0xf0   : > { %946 = vmatpush1.msra.mxu0 %v326_v53  ;;  %1009 = vmatpush1.msra.mxu1 %v578_v57  ;;  %v370_v53 = vld [vmem:[#allocation5 + $0x228] sm:$0xff]  ;;  %v431_v57 = vld [vmem:[#allocation5 + $0x410] sm:$0xff] }
  0xf1   : > { %947 = vmatprep.subr.mxu0 %v320_v55  ;;  %1010 = vmatprep.subr.mxu1 %v572_v59  ;;  %v475_v55 = vld [vmem:[#allocation5 + $0x570] sm:$0xff]  ;;  %v425_v59 = vld [vmem:[#allocation5 + $0x3e0] sm:$0xff] }
  0xf2   : > { %948 = vmatpush1.msra.mxu0 %v319_v58  ;;  %1011 = vmatpush1.msra.mxu1 %v571_v61  ;;  %v363_v58 = vld [vmem:[#allocation5 + $0x1f0] sm:$0xff]  ;;  %v424_v61 = vld [vmem:[#allocation5 + $0x3d8] sm:$0xff] }
  0xf3   : > { %949 = vmatprep.subr.mxu0 %v313_v60  ;;  %1012 = vmatprep.subr.mxu1 %v565_v63  ;;  %v468_v60 = vld [vmem:[#allocation5 + $0x538] sm:$0xff]  ;;  %v418_v63 = vld [vmem:[#allocation5 + $0x3a8] sm:$0xff] }
  0xf4   : > { %950 = vmatpush1.msra.mxu0 %v312_v62  ;;  %1013 = vmatpush1.msra.mxu1 %v564_v2  ;;  %v356_v62 = vld [vmem:[#allocation5 + $0x1b8] sm:$0xff]  ;;  %v417_v2 = vld [vmem:[#allocation5 + $0x3a0] sm:$0xff] }
  0xf5   : > { %951 = vmatprep.subr.mxu0 %v306_v1  ;;  %1014 = vmatprep.subr.mxu1 %v558_v4  ;;  %v461_v1 = vld [vmem:[#allocation5 + $0x500] sm:$0xff]  ;;  %v636_v4 = vld [vmem:[#allocation5 + $0xa78] sm:$0xff] }
  0xf6   : > { %952 = vmatpush1.msra.mxu0 %v305_v3  ;;  %1015 = vmatpush1.msra.mxu1 %v557_v6  ;;  %v349_v3 = vld [vmem:[#allocation5 + $0x180] sm:$0xff]  ;;  %v342_v6 = vld [vmem:[#allocation5 + $0x148] sm:$0xff] }
  0xf7   : > { %953 = vmatprep.subr.mxu0 %v523_v5  ;;  %1016 = vmatprep.subr.mxu1 %v551_v8  ;;  %v454_v5 = vld [vmem:[#allocation5 + $0x4c8] sm:$0xff]  ;;  %v447_v8 = vld [vmem:[#allocation5 + $0x490] sm:$0xff] }
  0xf8   : > { %954 = vmatpush2.msra.mxu0 %v522_v7  ;;  %1017 = vmatpush1.msra.mxu1 %v550_v10  ;;  %v629_v7 = vld [vmem:[#allocation5 + $0xa40] sm:$0xff]  ;;  %v622_v10 = vld [vmem:[#allocation5 + $0xa08] sm:$0xff] }
  0xf9   : > { %955 = vmatprep.subr.mxu0 %v516_v9  ;;  %1018 = vmatprep.subr.mxu1 %v544_v12  ;;  %v335_v9 = vld [vmem:[#allocation5 + $0x110] sm:$0xff]  ;;  %v328_v12 = vld [vmem:[#allocation5 + $0xd8] sm:$0xff] }
  0xfa   : > { %956 = vmatpush2.msra.mxu0 %v515_v11  ;;  %1019 = vmatpush1.msra.mxu1 %v543_v16  ;;  %v440_v11 = vld [vmem:[#allocation5 + $0x458] sm:$0xff]  ;;  %v433_v16 = vld [vmem:[#allocation5 + $0x420] sm:$0xff] }
  0xfb   : > { %957 = vmatprep.subr.mxu0 %v509_v14  ;;  %1020 = vmatprep.subr.mxu1 %v537_v18  ;;  %v615_v14 = vld [vmem:[#allocation5 + $0x9d0] sm:$0xff]  ;;  %v608_v18 = vld [vmem:[#allocation5 + $0x998] sm:$0xff] }
  0xfc   : > { %958 = vmatpush2.msra.mxu0 %v508_v17  ;;  %1021 = vmatpush1.msra.mxu1 %v536_v20  ;;  %v321_v17 = vld [vmem:[#allocation5 + $0xa0] sm:$0xff]  ;;  %v314_v20 = vld [vmem:[#allocation5 + $0x68] sm:$0xff] }
  0xfd   : > { %959 = vmatprep.subr.mxu0 %v502_v19  ;;  %1022 = vmatprep.subr.mxu1 %v530_v22  ;;  %v426_v19 = vld [vmem:[#allocation5 + $0x3e8] sm:$0xff]  ;;  %v419_v22 = vld [vmem:[#allocation5 + $0x3b0] sm:$0xff] }
  0xfe   : > { %960 = vmatpush2.msra.mxu0 %v501_v21  ;;  %985 = vmatprep.mubr.f32.mxu0 %v3406_v15  ;;  %v467_v15 = vld [vmem:[#allocation5 + $0x530] sm:$0xff]  ;;  %v601_v21 = vld [vmem:[#allocation5 + $0x960] sm:$0xff] }
  0xff   : > { %961 = vmatprep.subr.mxu0 %v495_v23  ;;  %1023 = vmatpush1.msra.mxu1 %v529_v25  ;;  %v307_v23 = vld [vmem:[#allocation5 + $0x30] sm:$0xff] }
 0x100   : > { %962 = vmatpush2.msra.mxu0 %v494_v24  ;;  %1056 = vmatprep.mubr.f32.mxu1 %v3195_v0  ;;  %v594_v24 = vld [vmem:[#allocation5 + $0x928] sm:$0xff]  ;;  %v587_v25 = vld [vmem:[#allocation5 + $0x8f0] sm:$0xff] }
 0x101   : > { %963 = vmatprep.subr.mxu0 %v488_v26  ;;  %1057 = vmatmul.mubr.f32.vlgmr.msra.gmra.mxu1 %v3403_v13  ;;  %v391_v13 = vld [vmem:[#allocation5 + $0x2d0] sm:$0xff]  ;;  %v2973_v26 = vld [vmem:[%s3387_s22 + $0x8] sm:$0xff] }
 0x102   : > { %964 = vmatpush2.msra.mxu0 %v487_v27  ;;  %2533 = vmatprep.subr.mxu1 %v524_v29  ;;  %v1264_v27 = vld [vmem:[#allocation7 + $0x530] sm:$0xff]  ;;  %v1263_v29 = vld [vmem:[#allocation7 + $0x528] sm:$0xff] }
 0x103   : > { %965 = vmatprep.subr.mxu0 %v481_v28  ;;  %2534 = vmatpush3.msra.mxu1 %v412_v31  ;;  %v580_v28 = vld [vmem:[#allocation5 + $0x8b8] sm:$0xff]  ;;  %v573_v31 = vld [vmem:[#allocation5 + $0x880] sm:$0xff] }
 0x104   : > { %966 = vmatpush2.msra.mxu0 %v480_v30  ;;  %2535 = vmatprep.subr.mxu1 %v517_v33  ;;  %v1260_v30 = vld [vmem:[#allocation7 + $0x4d8] sm:$0xff]  ;;  %v1256_v33 = vld [vmem:[#allocation7 + $0x480] sm:$0xff] }
 0x105   : > { %967 = vmatprep.subr.mxu0 %v474_v32  ;;  %2536 = vmatpush3.msra.mxu1 %v405_v35  ;;  %v1259_v32 = vld [vmem:[#allocation7 + $0x4d0] sm:$0xff]  ;;  %v1252_v35 = vld [vmem:[#allocation7 + $0x428] sm:$0xff] }
 0x106   : > { %968 = vmatpush2.msra.mxu0 %v473_v34  ;;  %2537 = vmatprep.subr.mxu1 %v510_v36  ;;  %v566_v34 = vld [vmem:[#allocation5 + $0x848] sm:$0xff]  ;;  %v1251_v36 = vld [vmem:[#allocation7 + $0x420] sm:$0xff] }
 0x107   : > { %969 = vmatprep.subr.mxu0 %v467_v15  ;;  %2538 = vmatpush3.msra.mxu1 %v398_v38  ;;  %v559_v15 = vld [vmem:[#allocation5 + $0x810] sm:$0xff]  ;;  %v552_v38 = vld [vmem:[#allocation5 + $0x7d8] sm:$0xff] }
 0x108   : > { %970 = vmatpush2.msra.mxu0 %v466_v37  ;;  %2539 = vmatprep.subr.mxu1 %v503_v40  ;;  %v1248_v37 = vld [vmem:[#allocation7 + $0x3d0] sm:$0xff]  ;;  %v1244_v40 = vld [vmem:[#allocation7 + $0x378] sm:$0xff] }
 0x109   : > { %971 = vmatprep.subr.mxu0 %v460_v39  ;;  %2540 = vmatpush3.msra.mxu1 %v391_v13  ;;  %v1247_v39 = vld [vmem:[#allocation7 + $0x3c8] sm:$0xff]  ;;  %v1243_v13 = vld [vmem:[#allocation7 + $0x370] sm:$0xff] }
 0x10a   : > { %972 = vmatpush2.msra.mxu0 %v459_v41  ;;  %2541 = vmatprep.subr.mxu1 %v496_v43  ;;  %v545_v41 = vld [vmem:[#allocation5 + $0x7a0] sm:$0xff]  ;;  %v538_v43 = vld [vmem:[#allocation5 + $0x768] sm:$0xff] }
 0x10b   : > { %973 = vmatprep.subr.mxu0 %v453_v42  ;;  %2542 = vmatpush3.msra.mxu1 %v384_v45  ;;  %v1240_v42 = vld [vmem:[#allocation7 + $0x320] sm:$0xff]  ;;  %v1236_v45 = vld [vmem:[#allocation7 + $0x2c8] sm:$0xff] }
 0x10c   : > { %974 = vmatpush2.msra.mxu0 %v452_v44  ;;  %2543 = vmatprep.subr.mxu1 %v489_v47  ;;  %v1239_v44 = vld [vmem:[#allocation7 + $0x318] sm:$0xff]  ;;  %v1235_v47 = vld [vmem:[#allocation7 + $0x2c0] sm:$0xff] }
 0x10d   : > { %975 = vmatprep.subr.mxu0 %v446_v46  ;;  %2544 = vmatpush3.msra.mxu1 %v377_v49  ;;  %v531_v46 = vld [vmem:[#allocation5 + $0x730] sm:$0xff]  ;;  %v1265_v49 = vld [vmem:[#allocation7 + $0x538] sm:$0xff] }
 0x10e   : > { %976 = vmatpush2.msra.mxu0 %v445_v48  ;;  %2545 = vmatprep.subr.mxu1 %v482_v51  ;;  %v1266_v48 = vld [vmem:[#allocation7 + $0x540] sm:$0xff]  ;;  %v1262_v51 = vld [vmem:[#allocation7 + $0x4e8] sm:$0xff] }
 0x10f   : > { %977 = vmatprep.subr.mxu0 %v439_v50  ;;  %2546 = vmatpush3.msra.mxu1 %v370_v53  ;;  %v1232_v50 = vld [vmem:[#allocation7 + $0x270] sm:$0xff] }
 0x110   : > { %978 = vmatpush2.msra.mxu0 %v438_v52  ;;  %2547 = vmatprep.subr.mxu1 %v475_v55  ;;  %v1231_v52 = vld [vmem:[#allocation7 + $0x268] sm:$0xff]  ;;  %v2974_v53 = vld [vmem:[%s3387_s22 + $0x10] sm:$0xff]  ;;  %v1228_v55 = vld [vmem:[#allocation7 + $0x218] sm:$0xff] }
 0x111   : > { %979 = vmatprep.subr.mxu0 %v432_v54  ;;  %2548 = vmatpush3.msra.mxu1 %v363_v58  ;;  %v1261_v54 = vld [vmem:[#allocation7 + $0x4e0] sm:$0xff]  ;;  %v1227_v58 = vld [vmem:[#allocation7 + $0x210] sm:$0xff] }
 0x112   : > { %980 = vmatpush2.msra.mxu0 %v431_v57  ;;  %2549 = vmatprep.subr.mxu1 %v468_v60  ;;  %v1258_v57 = vld [vmem:[#allocation7 + $0x490] sm:$0xff]  ;;  %v1224_v60 = vld [vmem:[#allocation7 + $0x1c0] sm:$0xff] }
 0x113   : > { %981 = vmatprep.subr.mxu0 %v425_v59  ;;  %2550 = vmatpush3.msra.mxu1 %v356_v62  ;;  %v1257_v59 = vld [vmem:[#allocation7 + $0x488] sm:$0xff]  ;;  %v1223_v62 = vld [vmem:[#allocation7 + $0x1b8] sm:$0xff] }
 0x114   : > { %982 = vmatpush2.msra.mxu0 %v424_v61  ;;  %2551 = vmatprep.subr.mxu1 %v461_v1  ;;  %v1254_v61 = vld [vmem:[#allocation7 + $0x438] sm:$0xff]  ;;  %v1220_v1 = vld [vmem:[#allocation7 + $0x168] sm:$0xff] }
 0x115   : > { %983 = vmatprep.subr.mxu0 %v418_v63  ;;  %2552 = vmatpush3.msra.mxu1 %v349_v3  ;;  %v1253_v63 = vld [vmem:[#allocation7 + $0x430] sm:$0xff]  ;;  %v1219_v3 = vld [vmem:[#allocation7 + $0x160] sm:$0xff] }
 0x116   : > { %984 = vmatpush2.msra.mxu0 %v417_v2  ;;  %2553 = vmatprep.subr.mxu1 %v454_v5  ;;  %v1250_v2 = vld [vmem:[#allocation7 + $0x3e0] sm:$0xff]  ;;  %v1216_v5 = vld [vmem:[#allocation7 + $0x110] sm:$0xff] }
 0x117   : > { %986 = vmatmul.mubr.f32.vlgmr.msra.gmra.mxu0 %v3411_v56  ;;  %2708 = vmatprep.subr.mxu0 %v3195_v0 }
 0x118   : > { %2709 = vmatpush3.msra.mxu0 %v636_v4  ;;  %2554 = vmatpush3.msra.mxu1 %v342_v6  ;;  %v1249_v4 = vld [vmem:[#allocation7 + $0x3d8] sm:$0xff]  ;;  %v1246_v6 = vld [vmem:[#allocation7 + $0x388] sm:$0xff] }
 0x119   : > { %2710 = vmatprep.subr.mxu0 %v3195_v0  ;;  %2555 = vmatprep.subr.mxu1 %v447_v8  ;;  %v1245_v8 = vld [vmem:[#allocation7 + $0x380] sm:$0xff] }
 0x11a   : > { %2711 = vmatpush3.msra.mxu0 %v629_v7  ;;  %2556 = vmatpush3.msra.mxu1 %v335_v9  ;;  %v1215_v7 = vld [vmem:[#allocation7 + $0x108] sm:$0xff]  ;;  %v1212_v9 = vld [vmem:[#allocation7 + $0xb8] sm:$0xff] }
 0x11b   : > { %2712 = vmatprep.subr.mxu0 %v3195_v0  ;;  %2557 = vmatprep.subr.mxu1 %v440_v11  ;;  %v1211_v11 = vld [vmem:[#allocation7 + $0xb0] sm:$0xff] }
 0x11c   : > { %2713 = vmatpush3.msra.mxu0 %v622_v10  ;;  %2558 = vmatpush3.msra.mxu1 %v328_v12  ;;  %v1242_v10 = vld [vmem:[#allocation7 + $0x330] sm:$0xff]  ;;  %v1241_v12 = vld [vmem:[#allocation7 + $0x328] sm:$0xff] }
 0x11d   : > { %2714 = vmatprep.subr.mxu0 %v3195_v0  ;;  %2559 = vmatprep.subr.mxu1 %v433_v16  ;;  %v1238_v16 = vld [vmem:[#allocation7 + $0x2d8] sm:$0xff] }
 0x11e   : > { %2715 = vmatpush3.msra.mxu0 %v615_v14  ;;  %2560 = vmatpush3.msra.mxu1 %v321_v17  ;;  %v1208_v14 = vld [vmem:[#allocation7 + $0x60] sm:$0xff]  ;;  %v1207_v17 = vld [vmem:[#allocation7 + $0x58] sm:$0xff] }
 0x11f   : > { %2716 = vmatprep.subr.mxu0 %v3195_v0  ;;  %2561 = vmatprep.subr.mxu1 %v426_v19  ;;  %v1204_v19 = vld [vmem:[#allocation7 + $0x8] sm:$0xff] }
 0x120   : > { %2717 = vmatpush3.msra.mxu0 %v608_v18  ;;  %2562 = vmatpush3.msra.mxu1 %v314_v20  ;;  %v1237_v18 = vld [vmem:[#allocation7 + $0x2d0] sm:$0xff]  ;;  %v1234_v20 = vld [vmem:[#allocation7 + $0x280] sm:$0xff] }
 0x121   : > { %2718 = vmatprep.subr.mxu0 %v3195_v0  ;;  %2563 = vmatprep.subr.mxu1 %v419_v22  ;;  %v1233_v22 = vld [vmem:[#allocation7 + $0x278] sm:$0xff] }
 0x122   : > { %2719 = vmatpush3.msra.mxu0 %v601_v21  ;;  %2564 = vmatpush3.msra.mxu1 %v307_v23  ;;  %v1203_v21 = vld [vmem:[#allocation7] sm:$0xff]  ;;  %v1230_v23 = vld [vmem:[#allocation7 + $0x228] sm:$0xff] }
 0x123   : > { %2720 = vmatprep.subr.mxu0 %v3195_v0  ;;  %1127 = vmatprep.mubr.f32.mxu1 %v2973_v26  ;;  %v1225_v26 = vld [vmem:[#allocation7 + $0x1c8] sm:$0xff] }
 0x124   : > { %2721 = vmatpush3.msra.mxu0 %v594_v24  ;;  %1128 = vmatmul.mubr.f32.vlgmr.msra.gmra.mxu1 %v3411_v56  ;;  %v1255_v56 = vld [vmem:[#allocation7 + $0x478] sm:$0xff]  ;;  %v1229_v24 = vld [vmem:[#allocation7 + $0x220] sm:$0xff] }
 0x125   : > { %2722 = vmatprep.subr.mxu0 %v3195_v0  ;;  %2740 = vmatprep.mubr.msk.f32.mxu0 %vm3196_vm0, %v3195_v0 }
 0x126   : > { %2723 = vmatpush3.msra.mxu0 %v587_v25  ;;  %1428 = vmatprep.subr.mxu1 %v1264_v27  ;;  %v1226_v25 = vld [vmem:[#allocation7 + $0x1d0] sm:$0xff]  ;;  %v1222_v27 = vld [vmem:[#allocation7 + $0x178] sm:$0xff] }
 0x127   : > { %2724 = vmatprep.subr.mxu0 %v3195_v0  ;;  %1429 = vmatpush1.msra.mxu1 %v1263_v29  ;;  %v1218_v29 = vld [vmem:[#allocation7 + $0x120] sm:$0xff] }
 0x128   : > { %2725 = vmatpush3.msra.mxu0 %v580_v28  ;;  %1430 = vmatprep.subr.mxu1 %v1260_v30  ;;  %v1221_v28 = vld [vmem:[#allocation7 + $0x170] sm:$0xff]  ;;  %v1217_v30 = vld [vmem:[#allocation7 + $0x118] sm:$0xff] }
 0x129   : > { %2726 = vmatprep.subr.mxu0 %v3195_v0  ;;  %1431 = vmatpush1.msra.mxu1 %v1259_v32  ;;  %v1213_v32 = vld [vmem:[#allocation7 + $0xc0] sm:$0xff] }
 0x12a   : > { %2727 = vmatpush3.msra.mxu0 %v573_v31  ;;  %1432 = vmatprep.subr.mxu1 %v1256_v33  ;;  %v1214_v31 = vld [vmem:[#allocation7 + $0xc8] sm:$0xff]  ;;  %v1210_v33 = vld [vmem:[#allocation7 + $0x70] sm:$0xff] }
 0x12b   : > { %2728 = vmatprep.subr.mxu0 %v3195_v0  ;;  %1433 = vmatpush1.msra.mxu1 %v1255_v56  ;;  %v1206_v56 = vld [vmem:[#allocation7 + $0x18] sm:$0xff] }
 0x12c   : > { %2729 = vmatpush3.msra.mxu0 %v566_v34  ;;  %1434 = vmatprep.subr.mxu1 %v1252_v35  ;;  %v1209_v34 = vld [vmem:[#allocation7 + $0x68] sm:$0xff]  ;;  %v1205_v35 = vld [vmem:[#allocation7 + $0x10] sm:$0xff] }
 0x12d   : > { %2730 = vmatprep.subr.mxu0 %v3195_v0  ;;  %1435 = vmatpush1.msra.mxu1 %v1251_v36 }
 0x12e   : > { %2731 = vmatpush3.msra.mxu0 %v559_v15  ;;  %1436 = vmatprep.subr.mxu1 %v1248_v37 }
 0x12f   : > { %2732 = vmatprep.subr.mxu0 %v3195_v0  ;;  %1437 = vmatpush1.msra.mxu1 %v1247_v39 }
 0x130   : > { %2733 = vmatpush3.msra.mxu0 %v552_v38  ;;  %1438 = vmatprep.subr.mxu1 %v1244_v40 }
 0x131   : > { %2734 = vmatprep.subr.mxu0 %v3195_v0  ;;  %1439 = vmatpush1.msra.mxu1 %v1243_v13  ;;  %v1328_v13 = vld [vmem:[#allocation7 + $0x550] sm:$0xff] }
 0x132   : > { %2735 = vmatpush3.msra.mxu0 %v545_v41  ;;  %1440 = vmatprep.subr.mxu1 %v1240_v42  ;;  %v1330_v42 = vld [vmem:[#allocation7 + $0x560] sm:$0xff] }
 0x133   : > { %2736 = vmatprep.subr.mxu0 %v3195_v0  ;;  %1441 = vmatpush1.msra.mxu1 %v1239_v44  ;;  %v1329_v44 = vld [vmem:[#allocation7 + $0x558] sm:$0xff] }
 0x134   : > { %2737 = vmatpush3.msra.mxu0 %v538_v43  ;;  %1442 = vmatprep.subr.mxu1 %v1236_v45  ;;  %v1327_v43 = vld [vmem:[#allocation7 + $0x548] sm:$0xff]  ;;  %v1324_v45 = vld [vmem:[#allocation7 + $0x4f8] sm:$0xff] }
 0x135   : > { %2738 = vmatprep.subr.mxu0 %v3195_v0  ;;  %1443 = vmatpush1.msra.mxu1 %v1235_v47  ;;  %v1323_v47 = vld [vmem:[#allocation7 + $0x4f0] sm:$0xff] }
 0x136   : > { %2739 = vmatpush3.msra.mxu0 %v531_v46  ;;  %1444 = vmatprep.subr.mxu1 %v1232_v50  ;;  %v1326_v46 = vld [vmem:[#allocation7 + $0x508] sm:$0xff]  ;;  %v1322_v50 = vld [vmem:[#allocation7 + $0x4b0] sm:$0xff] }
 0x137   : > { %1499 = vmatprep.subr.mxu0 %v1266_v48  ;;  %2741 = vmatmul.mubr.f32.vlgmr.msra.gmra.mxu0 %v2974_v53  ;;  %v1325_v48 = vld [vmem:[#allocation7 + $0x500] sm:$0xff]  ;;  %v1316_v53 = vld [vmem:[#allocation7 + $0x448] sm:$0xff] }
 0x138   : > { %1500 = vmatpush1.msra.mxu0 %v1265_v49  ;;  %1445 = vmatpush1.msra.mxu1 %v1231_v52  ;;  %v1320_v49 = vld [vmem:[#allocation7 + $0x4a0] sm:$0xff]  ;;  %v1321_v52 = vld [vmem:[#allocation7 + $0x4a8] sm:$0xff] }
 0x139   : > { %1501 = vmatprep.subr.mxu0 %v1262_v51  ;;  %1446 = vmatprep.subr.mxu1 %v1228_v55  ;;  %v1319_v51 = vld [vmem:[#allocation7 + $0x498] sm:$0xff]  ;;  %v1315_v55 = vld [vmem:[#allocation7 + $0x440] sm:$0xff] }
 0x13a   : > { %1502 = vmatpush1.msra.mxu0 %v1261_v54  ;;  %1447 = vmatpush1.msra.mxu1 %v1227_v58  ;;  %v1318_v54 = vld [vmem:[#allocation7 + $0x458] sm:$0xff]  ;;  %v1312_v58 = vld [vmem:[#allocation7 + $0x3f0] sm:$0xff] }
 0x13b   : > { %1503 = vmatprep.subr.mxu0 %v1258_v57  ;;  %1448 = vmatprep.subr.mxu1 %v1224_v60  ;;  %v1317_v57 = vld [vmem:[#allocation7 + $0x450] sm:$0xff]  ;;  %v1311_v60 = vld [vmem:[#allocation7 + $0x3e8] sm:$0xff] }
 0x13c   : > { %1504 = vmatpush1.msra.mxu0 %v1257_v59  ;;  %1449 = vmatpush1.msra.mxu1 %v1223_v62  ;;  %v1314_v59 = vld [vmem:[#allocation7 + $0x400] sm:$0xff]  ;;  %v1308_v62 = vld [vmem:[#allocation7 + $0x398] sm:$0xff] }
 0x13d   : > { %1505 = vmatprep.subr.mxu0 %v1254_v61  ;;  %1450 = vmatprep.subr.mxu1 %v1220_v1  ;;  %v1313_v61 = vld [vmem:[#allocation7 + $0x3f8] sm:$0xff]  ;;  %v1307_v1 = vld [vmem:[#allocation7 + $0x390] sm:$0xff] }
 0x13e   : > { %1506 = vmatpush1.msra.mxu0 %v1253_v63  ;;  %1451 = vmatpush1.msra.mxu1 %v1219_v3  ;;  %v1310_v63 = vld [vmem:[#allocation7 + $0x3a8] sm:$0xff]  ;;  %v1304_v3 = vld [vmem:[#allocation7 + $0x340] sm:$0xff] }
 0x13f   : > { %1507 = vmatprep.subr.mxu0 %v1250_v2  ;;  %1452 = vmatprep.subr.mxu1 %v1216_v5  ;;  %v1309_v2 = vld [vmem:[#allocation7 + $0x3a0] sm:$0xff]  ;;  %v1303_v5 = vld [vmem:[#allocation7 + $0x338] sm:$0xff] }
 0x140   : > { %1508 = vmatpush1.msra.mxu0 %v1249_v4  ;;  %1453 = vmatpush1.msra.mxu1 %v1215_v7  ;;  %v1306_v4 = vld [vmem:[#allocation7 + $0x350] sm:$0xff]  ;;  %v1300_v7 = vld [vmem:[#allocation7 + $0x2e8] sm:$0xff] }
 0x141   : > { %1509 = vmatprep.subr.mxu0 %v1246_v6  ;;  %1454 = vmatprep.subr.mxu1 %v1212_v9  ;;  %v1305_v6 = vld [vmem:[#allocation7 + $0x348] sm:$0xff]  ;;  %v1299_v9 = vld [vmem:[#allocation7 + $0x2e0] sm:$0xff] }
 0x142   : > { %1510 = vmatpush1.msra.mxu0 %v1245_v8  ;;  %1455 = vmatpush1.msra.mxu1 %v1211_v11  ;;  %v1302_v8 = vld [vmem:[#allocation7 + $0x2f8] sm:$0xff]  ;;  %v1296_v11 = vld [vmem:[#allocation7 + $0x290] sm:$0xff] }
 0x143   : > { %1511 = vmatprep.subr.mxu0 %v1242_v10  ;;  %1456 = vmatprep.subr.mxu1 %v1208_v14  ;;  %v1301_v10 = vld [vmem:[#allocation7 + $0x2f0] sm:$0xff]  ;;  %v1295_v14 = vld [vmem:[#allocation7 + $0x288] sm:$0xff] }
 0x144   : > { %1512 = vmatpush1.msra.mxu0 %v1241_v12  ;;  %1457 = vmatpush1.msra.mxu1 %v1207_v17  ;;  %v1298_v12 = vld [vmem:[#allocation7 + $0x2a0] sm:$0xff]  ;;  %v1292_v17 = vld [vmem:[#allocation7 + $0x238] sm:$0xff] }
 0x145   : > { %1513 = vmatprep.subr.mxu0 %v1238_v16  ;;  %1458 = vmatprep.subr.mxu1 %v1204_v19  ;;  %v1297_v16 = vld [vmem:[#allocation7 + $0x298] sm:$0xff]  ;;  %v1291_v19 = vld [vmem:[#allocation7 + $0x230] sm:$0xff] }
 0x146   : > { %1514 = vmatpush1.msra.mxu0 %v1237_v18  ;;  %1459 = vmatpush1.msra.mxu1 %v1203_v21  ;;  %v1294_v18 = vld [vmem:[#allocation7 + $0x248] sm:$0xff]  ;;  %v1288_v21 = vld [vmem:[#allocation7 + $0x1e0] sm:$0xff] }
 0x147   : > { %1515 = vmatprep.subr.mxu0 %v1234_v20  ;;  %1492 = vmatprep.mubr.f32.mxu1 %v3195_v0  ;;  %v1293_v20 = vld [vmem:[#allocation7 + $0x240] sm:$0xff] }
 0x148   : > { %1516 = vmatpush1.msra.mxu0 %v1233_v22  ;;  %1563 = vmatprep.mubr.f32.mxu0 %v3195_v0  ;;  %v1290_v22 = vld [vmem:[#allocation7 + $0x1f0] sm:$0xff] }
 0x149   : > { %1517 = vmatprep.subr.mxu0 %v1230_v23  ;;  %1577 = vmatprep.subr.mxu1 %v1328_v13  ;;  %v1268_v13 = vld [vmem:[#allocation7 + $0x28] sm:$0xff] }
 0x14a   : > { %1518 = vmatpush1.msra.mxu0 %v1229_v24 }
 0x14b   : > { %1519 = vmatprep.subr.mxu0 %v1226_v25 }
 0x14c   : > { %1520 = vmatpush1.msra.mxu0 %v1225_v26  ;;  %v1287_v26 = vld [vmem:[#allocation7 + $0x1d8] sm:$0xff] }
 0x14d   : > { %1521 = vmatprep.subr.mxu0 %v1222_v27  ;;  %v1289_v27 = vld [vmem:[#allocation7 + $0x1e8] sm:$0xff] }
 0x14e   : > { %1522 = vmatpush1.msra.mxu0 %v1221_v28  ;;  %v1284_v28 = vld [vmem:[#allocation7 + $0x188] sm:$0xff] }
 0x14f   : > { %1523 = vmatprep.subr.mxu0 %v1218_v29  ;;  %v1286_v29 = vld [vmem:[#allocation7 + $0x198] sm:$0xff] }
 0x150   : > { %1524 = vmatpush1.msra.mxu0 %v1217_v30  ;;  %v1283_v30 = vld [vmem:[#allocation7 + $0x180] sm:$0xff] }
 0x151   : > { %1525 = vmatprep.subr.mxu0 %v1214_v31  ;;  %v1285_v31 = vld [vmem:[#allocation7 + $0x190] sm:$0xff] }
 0x152   : > { %1526 = vmatpush1.msra.mxu0 %v1213_v32  ;;  %v1280_v32 = vld [vmem:[#allocation7 + $0x130] sm:$0xff] }
 0x153   : > { %1527 = vmatprep.subr.mxu0 %v1210_v33  ;;  %v1282_v33 = vld [vmem:[#allocation7 + $0x140] sm:$0xff] }
 0x154   : > { %1528 = vmatpush1.msra.mxu0 %v1209_v34  ;;  %v1279_v34 = vld [vmem:[#allocation7 + $0x128] sm:$0xff] }
 0x155   : > { %1529 = vmatprep.subr.mxu0 %v1206_v56  ;;  %v1281_v56 = vld [vmem:[#allocation7 + $0x138] sm:$0xff] }
 0x156   : > { %1530 = vmatpush1.msra.mxu0 %v1205_v35  ;;  %v1276_v35 = vld [vmem:[#allocation7 + $0xd8] sm:$0xff] }
 0x157   : > { %1648 = vmatprep.subr.mxu0 %v1330_v42  ;;  %v1270_v42 = vld [vmem:[#allocation7 + $0x38] sm:$0xff] }
 0x15a   : > { %v774_v15 = vpop.f32.mrf.mxu1 }
 0x15c   : > { %v776_v37 = vpop.f32.mrf.mxu1 }
 0x175   : > { %v703_v36 = vpop.f32.mrf.mxu0 }
 0x176   : > { %v775_v39 = vadd.f32 %v774_v15, %v703_v36  ;;  %v1278_v15 = vld [vmem:[#allocation7 + $0xe8] sm:$0xff]  ;;  %v1275_v36 = vld [vmem:[#allocation7 + $0xd0] sm:$0xff] }
 0x177   : > { %v705_v38 = vpop.f32.mrf.mxu0 }
 0x178   : > { %v777_v40 = vadd.f32 %v776_v37, %v705_v38  ;;  %v1277_v37 = vld [vmem:[#allocation7 + $0xe0] sm:$0xff] }
 0x179   : > { %v1272_v38 = vld [vmem:[#allocation7 + $0x80] sm:$0xff] }
 0x17a   : > { %v1427_v41 = vmul.f32 %v777_v40, %v775_v39  ;;  %v1274_v39 = vld [vmem:[#allocation7 + $0x90] sm:$0xff]  ;;  %v1271_v40 = vld [vmem:[#allocation7 + $0x78] sm:$0xff] }
 0x17c   : > { %1493 = vmatmul.mubr.f32.vlgmr.msra.gmra.mxu1 %v1427_v41  ;;  %1564 = vmatmul.mubr.f32.vlgmr.msra.gmra.mxu0 %v1427_v41  ;;  %v1273_v41 = vld [vmem:[#allocation7 + $0x88] sm:$0xff] }
 0x17d   : > { %1578 = vmatpush1.msra.mxu1 %v1327_v43  ;;  %1649 = vmatpush1.msra.mxu0 %v1329_v44  ;;  %v1267_v43 = vld [vmem:[#allocation7 + $0x20] sm:$0xff]  ;;  %v1269_v44 = vld [vmem:[#allocation7 + $0x30] sm:$0xff] }
 0x17e   : > { %1579 = vmatprep.subr.mxu1 %v1324_v45  ;;  %1650 = vmatprep.subr.mxu0 %v1326_v46  ;;  %v1362_v45 = vld [vmem:[#allocation7 + $0xae8] sm:$0xff] }
 0x17f   : > { %1580 = vmatpush1.msra.mxu1 %v1323_v47  ;;  %1651 = vmatpush1.msra.mxu0 %v1325_v48  ;;  %v1394_v46 = vld [vmem:[#allocation7 + $0x15e8] sm:$0xff] }
 0x180   : > { %1581 = vmatprep.subr.mxu1 %v1320_v49  ;;  %1652 = vmatprep.subr.mxu0 %v1322_v50 }
 0x181   : > { %1582 = vmatpush1.msra.mxu1 %v1319_v51  ;;  %1653 = vmatpush1.msra.mxu0 %v1321_v52 }
 0x182   : > { %1583 = vmatprep.subr.mxu1 %v1316_v53  ;;  %1654 = vmatprep.subr.mxu0 %v1318_v54 }
 0x183   : > { %1584 = vmatpush1.msra.mxu1 %v1315_v55  ;;  %1655 = vmatpush1.msra.mxu0 %v1317_v57 }
 0x184   : > { %1585 = vmatprep.subr.mxu1 %v1312_v58  ;;  %1656 = vmatprep.subr.mxu0 %v1314_v59 }
 0x185   : > { %1586 = vmatpush1.msra.mxu1 %v1311_v60  ;;  %1657 = vmatpush1.msra.mxu0 %v1313_v61 }
 0x186   : > { %1587 = vmatprep.subr.mxu1 %v1308_v62  ;;  %1658 = vmatprep.subr.mxu0 %v1310_v63 }
 0x187   : > { %1588 = vmatpush1.msra.mxu1 %v1307_v1  ;;  %1659 = vmatpush1.msra.mxu0 %v1309_v2 }
 0x188   : > { %1589 = vmatprep.subr.mxu1 %v1304_v3  ;;  %1660 = vmatprep.subr.mxu0 %v1306_v4 }
 0x189   : > { %1590 = vmatpush1.msra.mxu1 %v1303_v5  ;;  %1661 = vmatpush1.msra.mxu0 %v1305_v6 }
 0x18a   : > { %1591 = vmatprep.subr.mxu1 %v1300_v7  ;;  %1662 = vmatprep.subr.mxu0 %v1302_v8 }
 0x18b   : > { %1592 = vmatpush1.msra.mxu1 %v1299_v9  ;;  %1663 = vmatpush1.msra.mxu0 %v1301_v10 }
 0x18c   : > { %1593 = vmatprep.subr.mxu1 %v1296_v11  ;;  %1664 = vmatprep.subr.mxu0 %v1298_v12  ;;  %v1346_v11 = vld [vmem:[#allocation7 + $0x568] sm:$0xff] }
 0x18d   : > { %1594 = vmatpush1.msra.mxu1 %v1295_v14  ;;  %1665 = vmatpush1.msra.mxu0 %v1297_v16  ;;  %v1378_v12 = vld [vmem:[#allocation7 + $0x1068] sm:$0xff]  ;;  %v1361_v14 = vld [vmem:[#allocation7 + $0xa90] sm:$0xff] }
 0x18e   : > { %1595 = vmatprep.subr.mxu1 %v1292_v17  ;;  %1666 = vmatprep.subr.mxu0 %v1294_v18  ;;  %v1393_v16 = vld [vmem:[#allocation7 + $0x1590] sm:$0xff] }
 0x18f   : > { %1596 = vmatpush1.msra.mxu1 %v1291_v19  ;;  %1667 = vmatpush1.msra.mxu0 %v1293_v20  ;;  %v1345_v17 = vld [vmem:[#allocation7 + $0x510] sm:$0xff]  ;;  %v1360_v19 = vld [vmem:[#allocation7 + $0xa38] sm:$0xff] }
 0x190   : > { %1597 = vmatprep.subr.mxu1 %v1288_v21  ;;  %1668 = vmatprep.subr.mxu0 %v1290_v22  ;;  %v1377_v18 = vld [vmem:[#allocation7 + $0x1010] sm:$0xff]  ;;  %v1392_v20 = vld [vmem:[#allocation7 + $0x1538] sm:$0xff] }
 0x191   : > { %1641 = vmatprep.mubr.f32.mxu1 %v3195_v0  ;;  %1712 = vmatprep.mubr.f32.mxu0 %v3195_v0  ;;  %v1344_v21 = vld [vmem:[#allocation7 + $0x4b8] sm:$0xff] }
 0x192   : > { %1598 = vmatpush1.msra.mxu1 %v1287_v26  ;;  %1669 = vmatpush1.msra.mxu0 %v1289_v27  ;;  %v1376_v22 = vld [vmem:[#allocation7 + $0xfb8] sm:$0xff]  ;;  %v1343_v26 = vld [vmem:[#allocation7 + $0x460] sm:$0xff] }
 0x193   : > { %1599 = vmatprep.subr.mxu1 %v1284_v28  ;;  %1670 = vmatprep.subr.mxu0 %v1286_v29  ;;  %v1375_v27 = vld [vmem:[#allocation7 + $0xf60] sm:$0xff]  ;;  %v1358_v28 = vld [vmem:[#allocation7 + $0x988] sm:$0xff] }
 0x194   : > { %1600 = vmatpush1.msra.mxu1 %v1283_v30  ;;  %1671 = vmatpush1.msra.mxu0 %v1285_v31  ;;  %v1390_v29 = vld [vmem:[#allocation7 + $0x1488] sm:$0xff] }
 0x195   : > { %1601 = vmatprep.subr.mxu1 %v1280_v32  ;;  %1672 = vmatprep.subr.mxu0 %v1282_v33  ;;  %v1342_v30 = vld [vmem:[#allocation7 + $0x408] sm:$0xff]  ;;  %v1357_v32 = vld [vmem:[#allocation7 + $0x930] sm:$0xff] }
 0x196   : > { %v916_v24 = vpop.f32.mrf.mxu0  ;;  %1602 = vmatpush1.msra.mxu1 %v1279_v34  ;;  %1673 = vmatpush1.msra.mxu0 %v1281_v56  ;;  %v1374_v31 = vld [vmem:[#allocation7 + $0xf08] sm:$0xff]  ;;  %v1341_v33 = vld [vmem:[#allocation7 + $0x3b0] sm:$0xff]  ;;  %v1356_v56 = vld [vmem:[#allocation7 + $0x8d8] sm:$0xff] }
 0x197   : > { %1603 = vmatprep.subr.mxu1 %v1276_v35  ;;  %1674 = vmatprep.subr.mxu0 %v1278_v15  ;;  %v1389_v34 = vld [vmem:[#allocation7 + $0x1430] sm:$0xff]  ;;  %v1340_v15 = vld [vmem:[#allocation7 + $0x358] sm:$0xff] }
 0x198   : > { %1604 = vmatpush1.msra.mxu1 %v1275_v36  ;;  %1675 = vmatpush1.msra.mxu0 %v1277_v37  ;;  %v918_v47 = vpop.f32.mrf.mxu0  ;;  %v1373_v35 = vld [vmem:[#allocation7 + $0xeb0] sm:$0xff]  ;;  %v1388_v36 = vld [vmem:[#allocation7 + $0x13d8] sm:$0xff]  ;;  %v1355_v37 = vld [vmem:[#allocation7 + $0x880] sm:$0xff] }
 0x199   : > { %1605 = vmatprep.subr.mxu1 %v1272_v38  ;;  %1676 = vmatprep.subr.mxu0 %v1274_v39  ;;  %v1372_v38 = vld [vmem:[#allocation7 + $0xe58] sm:$0xff]  ;;  %v1339_v39 = vld [vmem:[#allocation7 + $0x300] sm:$0xff] }
 0x19a   : > { %1606 = vmatpush1.msra.mxu1 %v1271_v40  ;;  %1677 = vmatpush1.msra.mxu0 %v1273_v41  ;;  %v1387_v40 = vld [vmem:[#allocation7 + $0x1380] sm:$0xff]  ;;  %v1354_v41 = vld [vmem:[#allocation7 + $0x828] sm:$0xff] }
 0x19b   : > { %1607 = vmatprep.subr.mxu1 %v1268_v13  ;;  %1678 = vmatprep.subr.mxu0 %v1270_v42  ;;  %v1371_v13 = vld [vmem:[#allocation7 + $0xe00] sm:$0xff]  ;;  %v1338_v42 = vld [vmem:[#allocation7 + $0x2a8] sm:$0xff] }
 0x19c   : > { %1608 = vmatpush1.msra.mxu1 %v1267_v43  ;;  %1679 = vmatpush1.msra.mxu0 %v1269_v44  ;;  %v1386_v43 = vld [vmem:[#allocation7 + $0x1328] sm:$0xff]  ;;  %v1353_v44 = vld [vmem:[#allocation7 + $0x7d0] sm:$0xff] }
 0x19d   : > { %2585 = vmatprep.subr.mxu1 %v1362_v45  ;;  %2620 = vmatprep.subr.mxu0 %v1394_v46  ;;  %v1370_v45 = vld [vmem:[#allocation7 + $0xda8] sm:$0xff]  ;;  %v1337_v46 = vld [vmem:[#allocation7 + $0x250] sm:$0xff] }
 0x19e   : > { %v845_v23 = vpop.f32.mrf.mxu1 }
 0x19f   : > { %v3447_v25 = vadd.f32 %v916_v24, %v845_v23  ;;  %v1359_v23 = vld [vmem:[#allocation7 + $0x9e0] sm:$0xff] }
 0x1a0   : > { %v847_v52 = vpop.f32.mrf.mxu1  ;;  %v1391_v24 = vld [vmem:[#allocation7 + $0x14e0] sm:$0xff] }
 0x1a1   : > { %v919_v60 = vadd.f32 %v918_v47, %v847_v52  ;;  %v1385_v47 = vld [vmem:[#allocation7 + $0x12d0] sm:$0xff]  ;;  %v1351_v52 = vld [vmem:[#allocation7 + $0x720] sm:$0xff] }
 0x1c1   : > { %v1058_v53 = vpop.f32.mrf.mxu1 }
 0x1c3   : > { %v1060_v54 = vpop.f32.mrf.mxu1 }
 0x1d7   : > { %v987_v48 = vpop.f32.mrf.mxu0 }
 0x1d8   : > { %v1059_v61 = vadd.f32 %v1058_v53, %v987_v48  ;;  %v1352_v48 = vld [vmem:[#allocation7 + $0x778] sm:$0xff] }
 0x1d9   : > { %v989_v49 = vpop.f32.mrf.mxu0  ;;  %v1368_v53 = vld [vmem:[#allocation7 + $0xcf8] sm:$0xff] }
 0x1da   : > { %v1061_v1 = vadd.f32 %v1060_v54, %v989_v49  ;;  %v1369_v49 = vld [vmem:[#allocation7 + $0xd50] sm:$0xff]  ;;  %v1335_v54 = vld [vmem:[#allocation7 + $0x1a0] sm:$0xff] }
 0x1e4   : > { %v2565_v55 = vpop.f32.mrf.mxu1 }
 0x1e6   : > { %v2566_v57 = vpop.f32.mrf.mxu1 }
 0x1e7   : > { %v2567_v62 = vadd.f32 %v2566_v57, %v2565_v55  ;;  %v1383_v55 = vld [vmem:[#allocation7 + $0x1220] sm:$0xff]  ;;  %v1350_v57 = vld [vmem:[#allocation7 + $0x6c8] sm:$0xff] }
 0x1f7   : > { %v1199_v50 = vpop.f32.mrf.mxu0 }
 0x1f8   : > { %v1200_v5 = vadd.f32 %v2567_v62, %v1199_v50  ;;  %v1336_v50 = vld [vmem:[#allocation7 + $0x1f8] sm:$0xff]  ;;  %v1366_v62 = vld [vmem:[#allocation7 + $0xc48] sm:$0xff] }
 0x1f9   : > { %v2742_v51 = vpop.f32.mrf.mxu0 }
 0x1fa   : > { %v1384_v51 = vld [vmem:[#allocation7 + $0x1278] sm:$0xff] }
 0x23c   : > { %v1494_v58 = vpop.f32.mrf.mxu1  ;;  %v1565_v59 = vpop.f32.mrf.mxu0 }
 0x23d   : > { %v3449_v2 = vadd.f32 %v1494_v58, %v919_v60  ;;  %v3453_v6 = vadd.f32 %v1565_v59, %v1061_v1  ;;  %v1367_v58 = vld [vmem:[#allocation7 + $0xca0] sm:$0xff]  ;;  %v1334_v59 = vld [vmem:[#allocation7 + $0x148] sm:$0xff]  ;;  %v1381_v1 = vld [vmem:[#allocation7 + $0x1170] sm:$0xff] }
 0x23e   : > { %v1496_v63 = vpop.f32.mrf.mxu1  ;;  %v1567_v4 = vpop.f32.mrf.mxu0  ;;  %v1382_v60 = vld [vmem:[#allocation7 + $0x11c8] sm:$0xff] }
 0x23f   : > { %v3451_v3 = vadd.f32 %v1496_v63, %v1059_v61  ;;  %v3457_v8 = vadd.f32 %v1567_v4, %v1200_v5  ;;  %v1349_v61 = vld [vmem:[#allocation7 + $0x670] sm:$0xff]  ;;  %v1348_v4 = vld [vmem:[#allocation7 + $0x618] sm:$0xff] }
 0x240   : > { %v1333_v63 = vld [vmem:[#allocation7 + $0xf0] sm:$0xff] }
 0x241   : > { %v1574_v7 = vmax.f32 %v3449_v2, %v3451_v3  ;;  %v1365_v5 = vld [vmem:[#allocation7 + $0xbf0] sm:$0xff] }
 0x243   : > { %v1575_v9 = vmax.f32 %v1574_v7, %v3453_v6  ;;  %v1332_v7 = vld [vmem:[#allocation7 + $0x98] sm:$0xff] }
 0x245   : > { %v1576_v10 = vmax.f32 %v1575_v9, %v3457_v8  ;;  %v1380_v9 = vld [vmem:[#allocation7 + $0x1118] sm:$0xff] }
 0x247   : > { %1642 = vmatmul.mubr.f32.vlgmr.msra.gmra.mxu1 %v1576_v10  ;;  %1713 = vmatmul.mubr.f32.vlgmr.msra.gmra.mxu0 %v1576_v10  ;;  %v1347_v10 = vld [vmem:[#allocation7 + $0x5c0] sm:$0xff] }
 0x248   : > { %2586 = vmatpush3.msra.mxu1 %v1346_v11  ;;  %2621 = vmatpush3.msra.mxu0 %v1378_v12  ;;  %v1364_v11 = vld [vmem:[#allocation7 + $0xb98] sm:$0xff]  ;;  %v1331_v12 = vld [vmem:[#allocation7 + $0x40] sm:$0xff] }
 0x249   : > { %2587 = vmatprep.subr.mxu1 %v1361_v14  ;;  %2622 = vmatprep.subr.mxu0 %v1393_v16  ;;  %v1379_v14 = vld [vmem:[#allocation7 + $0x10c0] sm:$0xff] }
 0x24a   : > { %2588 = vmatpush3.msra.mxu1 %v1345_v17  ;;  %2623 = vmatpush3.msra.mxu0 %v1377_v18  ;;  %v1363_v16 = vld [vmem:[#allocation7 + $0xb40] sm:$0xff] }
 0x24b   : > { %2589 = vmatprep.subr.mxu1 %v1360_v19  ;;  %2624 = vmatprep.subr.mxu0 %v1392_v20 }
 0x24c   : > { %2590 = vmatpush3.msra.mxu1 %v1344_v21  ;;  %2625 = vmatpush3.msra.mxu0 %v1376_v22 }
 0x24d   : > { %2591 = vmatprep.subr.mxu1 %v1359_v23  ;;  %2626 = vmatprep.subr.mxu0 %v1391_v24 }
 0x24e   : > { %2592 = vmatpush3.msra.mxu1 %v1343_v26  ;;  %2627 = vmatpush3.msra.mxu0 %v1375_v27 }
 0x24f   : > { %2593 = vmatprep.subr.mxu1 %v1358_v28  ;;  %2628 = vmatprep.subr.mxu0 %v1390_v29 }
 0x250   : > { %2594 = vmatpush3.msra.mxu1 %v1342_v30  ;;  %2629 = vmatpush3.msra.mxu0 %v1374_v31 }
 0x251   : > { %2595 = vmatprep.subr.mxu1 %v1357_v32  ;;  %2630 = vmatprep.subr.mxu0 %v1389_v34  ;;  %v1410_v32 = vld [vmem:[#allocation7 + $0x570] sm:$0xff] }
 0x252   : > { %2596 = vmatpush3.msra.mxu1 %v1341_v33  ;;  %2631 = vmatpush3.msra.mxu0 %v1373_v35  ;;  %v1409_v33 = vld [vmem:[#allocation7 + $0x518] sm:$0xff] }
 0x253   : > { %2597 = vmatprep.subr.mxu1 %v1356_v56  ;;  %2632 = vmatprep.subr.mxu0 %v1388_v36  ;;  %v1406_v56 = vld [vmem:[#allocation7 + $0x410] sm:$0xff]  ;;  %v1405_v35 = vld [vmem:[#allocation7 + $0x3b8] sm:$0xff]  ;;  %v1404_v36 = vld [vmem:[#allocation7 + $0x360] sm:$0xff] }
 0x254   : > { %2598 = vmatpush3.msra.mxu1 %v1340_v15  ;;  %2633 = vmatpush3.msra.mxu0 %v1372_v38 }
 0x255   : > { %2599 = vmatprep.subr.mxu1 %v1355_v37  ;;  %2634 = vmatprep.subr.mxu0 %v1387_v40  ;;  %v1403_v37 = vld [vmem:[#allocation7 + $0x308] sm:$0xff]  ;;  %v1401_v40 = vld [vmem:[#allocation7 + $0x258] sm:$0xff] }
 0x256   : > { %2600 = vmatpush3.msra.mxu1 %v1339_v39  ;;  %2635 = vmatpush3.msra.mxu0 %v1371_v13  ;;  %v1402_v39 = vld [vmem:[#allocation7 + $0x2b0] sm:$0xff]  ;;  %v1399_v13 = vld [vmem:[#allocation7 + $0x1a8] sm:$0xff] }
 0x257   : > { %2601 = vmatprep.subr.mxu1 %v1354_v41  ;;  %2636 = vmatprep.subr.mxu0 %v1386_v43  ;;  %v1400_v41 = vld [vmem:[#allocation7 + $0x200] sm:$0xff]  ;;  %v1397_v43 = vld [vmem:[#allocation7 + $0xf8] sm:$0xff] }
 0x258   : > { %2602 = vmatpush3.msra.mxu1 %v1338_v42  ;;  %2637 = vmatpush3.msra.mxu0 %v1370_v45  ;;  %v1398_v42 = vld [vmem:[#allocation7 + $0x150] sm:$0xff]  ;;  %v1395_v45 = vld [vmem:[#allocation7 + $0x48] sm:$0xff] }
 0x259   : > { %2603 = vmatprep.subr.mxu1 %v1353_v44  ;;  %2638 = vmatprep.subr.mxu0 %v1385_v47  ;;  %v1396_v44 = vld [vmem:[#allocation7 + $0xa0] sm:$0xff]  ;;  %v1426_v47 = vld [vmem:[#allocation7 + $0x578] sm:$0xff] }
 0x25a   : > { %2604 = vmatpush3.msra.mxu1 %v1337_v46  ;;  %2639 = vmatpush3.msra.mxu0 %v1369_v49  ;;  %v1424_v49 = vld [vmem:[#allocation7 + $0x4c8] sm:$0xff] }
 0x25b   : > { %2605 = vmatprep.subr.mxu1 %v1352_v48  ;;  %2640 = vmatprep.subr.mxu0 %v1384_v51  ;;  %v1425_v48 = vld [vmem:[#allocation7 + $0x520] sm:$0xff]  ;;  %v1422_v51 = vld [vmem:[#allocation7 + $0x418] sm:$0xff] }
 0x25c   : > { %2606 = vmatpush3.msra.mxu1 %v1336_v50  ;;  %2641 = vmatpush3.msra.mxu0 %v1368_v53  ;;  %v1423_v50 = vld [vmem:[#allocation7 + $0x470] sm:$0xff]  ;;  %v1420_v53 = vld [vmem:[#allocation7 + $0x368] sm:$0xff] }
 0x25d   : > { %2607 = vmatprep.subr.mxu1 %v1351_v52  ;;  %2642 = vmatprep.subr.mxu0 %v1383_v55  ;;  %v1421_v52 = vld [vmem:[#allocation7 + $0x3c0] sm:$0xff]  ;;  %v1418_v55 = vld [vmem:[#allocation7 + $0x2b8] sm:$0xff] }
 0x25e   : > { %2608 = vmatpush3.msra.mxu1 %v1335_v54  ;;  %2643 = vmatpush3.msra.mxu0 %v1367_v58  ;;  %v1419_v54 = vld [vmem:[#allocation7 + $0x310] sm:$0xff]  ;;  %v1416_v58 = vld [vmem:[#allocation7 + $0x208] sm:$0xff] }
 0x25f   : > { %2609 = vmatprep.subr.mxu1 %v1350_v57  ;;  %2644 = vmatprep.subr.mxu0 %v1382_v60  ;;  %v1417_v57 = vld [vmem:[#allocation7 + $0x260] sm:$0xff]  ;;  %v1414_v60 = vld [vmem:[#allocation7 + $0x158] sm:$0xff] }
 0x260   : > { %2610 = vmatpush3.msra.mxu1 %v1334_v59  ;;  %2645 = vmatpush3.msra.mxu0 %v1366_v62  ;;  %v1415_v59 = vld [vmem:[#allocation7 + $0x1b0] sm:$0xff]  ;;  %v1412_v62 = vld [vmem:[#allocation7 + $0xa8] sm:$0xff] }
 0x261   : > { %2611 = vmatprep.subr.mxu1 %v1349_v61  ;;  %2646 = vmatprep.subr.mxu0 %v1381_v1  ;;  %v1413_v61 = vld [vmem:[#allocation7 + $0x100] sm:$0xff] }
 0x262   : > { %2612 = vmatpush3.msra.mxu1 %v1333_v63  ;;  %2647 = vmatpush3.msra.mxu0 %v1365_v5  ;;  %v1411_v63 = vld [vmem:[#allocation7 + $0x50] sm:$0xff] }
 0x263   : > { %2613 = vmatprep.subr.mxu1 %v1348_v4  ;;  %2648 = vmatprep.subr.mxu0 %v1380_v9 }
 0x264   : > { %2614 = vmatpush3.msra.mxu1 %v1332_v7  ;;  %2649 = vmatpush3.msra.mxu0 %v1364_v11 }
 0x265   : > { %2615 = vmatprep.subr.mxu1 %v1347_v10  ;;  %2650 = vmatprep.subr.mxu0 %v1379_v14 }
 0x266   : > { %2616 = vmatpush3.msra.mxu1 %v1331_v12  ;;  %2651 = vmatpush3.msra.mxu0 %v1363_v16 }
 0x267   : > { %2743 = vmatprep.subr.mxu1 %v3195_v0  ;;  %2778 = vmatprep.subr.mxu0 %v3195_v0 }
 0x307   : > { %v1643_v17 = vpop.f32.mrf.mxu1  ;;  %v1714_v18 = vpop.f32.mrf.mxu0 }
 0x308   : > { %v1719_v19 = vsub.f32 %v3449_v2, %v1643_v17  ;;  %v1721_v20 = vsub.f32 %v3453_v6, %v1714_v18  ;;  %v2514_v18 = vld [vmem:[#allocation10] ss:$0 sm:$0xff] }
 0x309   : > { %v1645_v21 = vpop.f32.mrf.mxu1  ;;  %v1716_v22 = vpop.f32.mrf.mxu0 }
 0x30a   : > { %v1723_v23 = vmul.f32 1.442695, %v1719_v19  ;;  %v1720_v24 = vsub.f32 %v3451_v3, %v1645_v21  ;;  %v1722_v26 = vsub.f32 %v3457_v8, %v1716_v22  ;;  %v1727_v27 = vmul.f32 1.442695, %v1721_v20  ;;  %v1408_v3 = vld [vmem:[#allocation7 + $0x4c0] sm:$0xff]  ;;  %v1407_v8 = vld [vmem:[#allocation7 + $0x468] sm:$0xff] }
 0x30b   : > { %v3506_v22 = vld [vmem:[%s3387_s22 + $0x8] sm:$0xff] }
 0x30c   : > { %v1725_v28 = vmul.f32 1.442695, %v1720_v24  ;;  %v1729_v29 = vmul.f32 1.442695, %v1722_v26  ;;  %2959 = vpow2.f32 %v1723_v23 }
 0x30e   : > { %2961 = vpow2.f32 %v1725_v28 }
 0x30f   : > { %2963 = vpow2.f32 %v1729_v29 }
 0x310   : > { %2965 = vpow2.f32 %v1727_v27 }
 0x319   : > { %v2960_v30 = vpop.eup %2959 }
 0x31b   : > { %v2962_v31 = vpop.eup %2961 }
 0x31c   : > { %v2964_v2 = vpop.eup %2963  ;;  %1799 = vmatprep.mubr.f32.mxu1 %v2962_v31  ;;  %v1731_v34 = vadd.f32 %v2962_v31, %v2960_v30  ;;  %v2056_v31 = vld [vmem:[#allocation8 + $0x10] sm:$0xff] }
 0x31d   : > { %v2966_v6 = vpop.eup %2965  ;;  %1869 = vmatprep.mubr.f32.mxu0 %v2964_v2  ;;  %1800 = vmatmul.mubr.f32.vlgmr.msra.gmra.mxu1 %v2960_v30  ;;  %v2057_v30 = vld [vmem:[#allocation8 + $0x18] sm:$0xff] }
 0x31e   : > { %1870 = vmatmul.mubr.f32.vlgmr.msra.gmra.mxu0 %v2966_v6  ;;  %2744 = vmatpush3.msra.mxu1 %v1410_v32  ;;  %v1732_v15 = vadd.f32 %v2966_v6, %v1731_v34  ;;  %v2055_v32 = vld [vmem:[#allocation8 + $0x8] sm:$0xff]  ;;  %v2515_v34 = vld [vmem:[#allocation10 + $0x3] ss:$0 sm:$0xff] }
 0x31f   : > { %2745 = vmatprep.subr.mxu1 %v3195_v0  ;;  %2775 = vmatprep.mubr.msk.f32.mxu1 %vm3196_vm0, %v3195_v0 }
 0x320   : > { %2746 = vmatpush3.msra.mxu1 %v1409_v33  ;;  %2810 = vmatprep.mubr.msk.f32.mxu0 %vm3196_vm0, %v3195_v0  ;;  %v1733_v38 = vadd.f32 %v2964_v2, %v1732_v15  ;;  %v2054_v2 = vld [vmem:[#allocation8] sm:$0xff] }
 0x321   : > { %2747 = vmatprep.subr.mxu1 %v3195_v0  ;;  %2779 = vmatpush3.msra.mxu0 %v1426_v47 }
 0x322   : > { %2748 = vmatpush3.msra.mxu1 %v1408_v3  ;;  %2967 = vrcp.f32 %v1733_v38  ;;  %2780 = vmatprep.subr.mxu0 %v3195_v0  ;;  %v2065_v38 = vld [vmem:[#allocation8 + $0x70] sm:$0xff] }
 0x323   : > { %2749 = vmatprep.subr.mxu1 %v3195_v0  ;;  %2781 = vmatpush3.msra.mxu0 %v1425_v48 }
 0x324   : > { %2750 = vmatpush3.msra.mxu1 %v1407_v8  ;;  %2782 = vmatprep.subr.mxu0 %v3195_v0 }
 0x325   : > { %2751 = vmatprep.subr.mxu1 %v3195_v0  ;;  %2783 = vmatpush3.msra.mxu0 %v1424_v49  ;;  %v2519_v49 = vld [vmem:[#allocation10 + $0x2] ss:$0 sm:$0xff] }
 0x326   : > { %2752 = vmatpush3.msra.mxu1 %v1406_v56  ;;  %2784 = vmatprep.subr.mxu0 %v3195_v0 }
 0x327   : > { %2753 = vmatprep.subr.mxu1 %v3195_v0  ;;  %2785 = vmatpush3.msra.mxu0 %v1423_v50 }
 0x328   : > { %2754 = vmatpush3.msra.mxu1 %v1405_v35  ;;  %2786 = vmatprep.subr.mxu0 %v3195_v0  ;;  %v2516_v35 = vld [vmem:[#allocation10 + $0x4] ss:$0 sm:$0xff] }
 0x329   : > { %2755 = vmatprep.subr.mxu1 %v3195_v0  ;;  %2787 = vmatpush3.msra.mxu0 %v1422_v51 }
 0x32a   : > { %2756 = vmatpush3.msra.mxu1 %v1404_v36  ;;  %2788 = vmatprep.subr.mxu0 %v3195_v0 }
 0x32b   : > { %2757 = vmatprep.subr.mxu1 %v3195_v0  ;;  %2789 = vmatpush3.msra.mxu0 %v1421_v52 }
 0x32c   : > { %2758 = vmatpush3.msra.mxu1 %v1403_v37  ;;  %2790 = vmatprep.subr.mxu0 %v3195_v0  ;;  %v2066_v37 = vld [vmem:[#allocation8 + $0x78] sm:$0xff] }
 0x32d   : > { %2759 = vmatprep.subr.mxu1 %v3195_v0  ;;  %2791 = vmatpush3.msra.mxu0 %v1420_v53 }
 0x32e   : > { %2760 = vmatpush3.msra.mxu1 %v1402_v39  ;;  %2792 = vmatprep.subr.mxu0 %v3195_v0  ;;  %v2064_v39 = vld [vmem:[#allocation8 + $0x68] sm:$0xff] }
 0x32f   : > { %2761 = vmatprep.subr.mxu1 %v3195_v0  ;;  %v2968_v46 = vpop.eup %2967  ;;  %2793 = vmatpush3.msra.mxu0 %v1419_v54 }
 0x330   : > { %2762 = vmatpush3.msra.mxu1 %v1401_v40  ;;  %2794 = vmatprep.subr.mxu0 %v3195_v0  ;;  %v2063_v40 = vld [vmem:[#allocation8 + $0x60] sm:$0xff] }
 0x331   : > { %2763 = vmatprep.subr.mxu1 %v3195_v0  ;;  %2795 = vmatpush3.msra.mxu0 %v1418_v55  ;;  %v2976_v55 = vld [vmem:[%s3387_s22 + $0x10] sm:$0xff] }
 0x332   : > { %2764 = vmatpush3.msra.mxu1 %v1400_v41  ;;  %2796 = vmatprep.subr.mxu0 %v3195_v0  ;;  %v2062_v41 = vld [vmem:[#allocation8 + $0x58] sm:$0xff]  ;;  %vm2247_vm3 = vcmp.eq.f32.partialorder %v2976_v55, 0.0  ;;  %vm2254_vm4 = vcmp.gt.f32.partialorder %v2976_v55, 0.4  ;;  %vm2260_vm8 = vcmp.gt.f32.partialorder %v2976_v55, 0.0 }
 0x333   : > { %2765 = vmatprep.subr.mxu1 %v3195_v0  ;;  %2797 = vmatpush3.msra.mxu0 %v1417_v57  ;;  %v3197_v57 = vmov 3  }
 0x334   : > { %2766 = vmatpush3.msra.mxu1 %v1399_v13  ;;  %2798 = vmatprep.subr.mxu0 %v3195_v0  ;;  %v2061_v13 = vld [vmem:[#allocation8 + $0x50] sm:$0xff] }
 0x335   : > { %2767 = vmatprep.subr.mxu1 %v3195_v0  ;;  %2799 = vmatpush3.msra.mxu0 %v1416_v58  ;;  %v3198_v58 = vmov 0  }
 0x336   : > { %2768 = vmatpush3.msra.mxu1 %v1398_v42  ;;  %2800 = vmatprep.subr.mxu0 %v3195_v0  ;;  %v2060_v42 = vld [vmem:[#allocation8 + $0x48] sm:$0xff] }
 0x337   : > { %2769 = vmatprep.subr.mxu1 %v3195_v0  ;;  %2801 = vmatpush3.msra.mxu0 %v1415_v59  ;;  %v2248_v59 = vsel %vm2247_vm3, 1, %v3198_v58 }
 0x338   : > { %2770 = vmatpush3.msra.mxu1 %v1397_v43  ;;  %2802 = vmatprep.subr.mxu0 %v3195_v0  ;;  %v2059_v43 = vld [vmem:[#allocation8 + $0x40] sm:$0xff] }
 0x339   : > { %2771 = vmatprep.subr.mxu1 %v3195_v0  ;;  %2803 = vmatpush3.msra.mxu0 %v1414_v60 }
 0x33a   : > { %2772 = vmatpush3.msra.mxu1 %v1396_v44  ;;  %2804 = vmatprep.subr.mxu0 %v3195_v0  ;;  %v2517_v44 = vld [vmem:[#allocation10 + $0x1] ss:$0 sm:$0xff] }
 0x33b   : > { %2773 = vmatprep.subr.mxu1 %v3195_v0  ;;  %2805 = vmatpush3.msra.mxu0 %v1413_v61 }
 0x33c   : > { %2774 = vmatpush3.msra.mxu1 %v1395_v45  ;;  %2806 = vmatprep.subr.mxu0 %v3195_v0 }
 0x33d   : > { %2776 = vmatmul.mubr.f32.vlgmr.msra.gmra.mxu1 %v2968_v46  ;;  %2813 = vmatprep.subr.mxu1 %v3195_v0 }
 0x33e   : > { %2821 = vmatprep.mubr.msk.f32.mxu1 %vm3196_vm0, %v3195_v0  ;;  %2807 = vmatpush3.msra.mxu0 %v1412_v62 }
 0x33f   : > { %2808 = vmatprep.subr.mxu0 %v3195_v0  ;;  %2814 = vmatpush3.msra.mxu1 %v2057_v30 }
 0x340   : > { %2809 = vmatpush3.msra.mxu0 %v1411_v63  ;;  %2815 = vmatprep.subr.mxu1 %v3195_v0 }
 0x341   : > { %2816 = vmatpush3.msra.mxu1 %v2056_v31  ;;  %2956 = vset.pattern.permute.xlu0 %v3197_v57 }
 0x342   : > { %2817 = vmatprep.subr.mxu1 %v3195_v0 }
 0x343   : > { %2818 = vmatpush3.msra.mxu1 %v2055_v32 }
 0x344   : > { %2819 = vmatprep.subr.mxu1 %v3195_v0 }
 0x345   : > { %2820 = vmatpush3.msra.mxu1 %v2054_v2 }
 0x346   : > { %2824 = vmatprep.subr.mxu1 %v3195_v0 }
 0x3dd   : > { %v2617_v1 = vpop.f32.mrf.mxu1 }
 0x3de   : > { %v2652_v4 = vpop.f32.mrf.mxu0 }
 0x3df   : > { %v2618_v5 = vpop.f32.mrf.mxu1 }
 0x3e0   : > { %v2653_v7 = vpop.f32.mrf.mxu0  ;;  %v2619_v9 = vadd.f32 %v2618_v5, %v2617_v1  ;;  %v3199_v5 = vmov 9  }
 0x3e1   : > { %v2654_v10 = vadd.f32 %v2653_v7, %v2652_v4  ;;  %v2255_v4 = vsel %vm2254_vm4, 1, %v3198_v58  ;;  %2957 = vset.pattern.permute.xlu1 %v3199_v5  ;;  %v2268_v7 = vld [vmem:[#allocation8 + $0x98] sm:$0xff] }
 0x3e3   : > { %v1872_v11 = vadd.f32 %v2654_v10, %v2619_v9  ;;  %v2267_v9 = vld [vmem:[#allocation8 + $0x90] sm:$0xff]  ;;  %v2266_v10 = vld [vmem:[#allocation8 + $0x88] sm:$0xff] }
 0x3e5   : > { %v1875_v12 = vmul.f32 %v1872_v11, %v3447_v25  ;;  %v2265_v11 = vld [vmem:[#allocation8 + $0x80] sm:$0xff] }
 0x3fd   : > { %v1942_v14 = vpop.f32.mrf.mxu1 }
 0x3fe   : > { %v1946_v16 = vmul.f32 %v1942_v14, %v1875_v12 }
 0x3ff   : > { %v2777_v17 = vpop.f32.mrf.mxu1 }
 0x400   : > { %2811 = vmatmul.mubr.f32.vlgmr.msra.gmra.mxu0 %v1946_v16 }
 0x4c0   : > { %v2018_v19 = vpop.f32.mrf.mxu0 }
 0x4c1   : > { %v2019_v20 = vadd.f32 %v2514_v18, %v2018_v19 }
 0x4c2   : > { %v2812_v21 = vpop.f32.mrf.mxu0 }
 0x4c3   : > { %v2028_v23 = vadd.f32 %v3506_v22, %v2019_v20  ;;  %v2521_v20 = vld [vmem:[#allocation10 + $0x5] ss:$0 sm:$0xff] }
 0x4c5   : > { %v2030_v24 = vsel %vm2029_vm1, %v2028_v23, 0.0 }
 0x4c6   : > { %2031 = vadd.xlane.f32.xlu0 %v2030_v24  ;;  %v2522_v24 = vld [vmem:[#allocation10 + $0x6] ss:$0 sm:$0xff] }
 0x54f   : > { %v2032_v26 = vpop.xlane.xlu0 %2031 }
 0x550   : > { %v2034_v27 = vmul.f32 0.03125, %v2032_v26 }
 0x552   : > { %v2035_v28 = vsub.f32 %v2028_v23, %v2034_v27 }
 0x554   : > { %v2036_v25 = vmul.f32 %v2035_v28, %v2035_v28 }
 0x556   : > { %v2037_v29 = vsel %vm2029_vm1, %v2036_v25, 0.0 }
 0x557   : > { %2038 = vadd.xlane.f32.xlu0 %v2037_v29  ;;  %v2523_v29 = vadd.f32 -1.0, %v2976_v55 }
 0x559   : > { %v2262_v32 = vsel %vm2260_vm8, %v2523_v29, %v2976_v55 }
 0x56d   : > { %2250 = vperm.xlu0 %2956, %v2248_v59  }
 0x571   : > { %2958 = vset.pattern.permute.xlu0 %v3199_v5 }
 0x5e0   : > { %v2039_v6 = vpop.xlane.xlu0 %2038 }
 0x5e1   : > { %v2040_v33 = vmul.f32 0.03125, %v2039_v6  ;;  %v300_v6 = vld [vmem:[%s3387_s22 + $0x18] sm:$0xff] }
 0x5e3   : > { %v2041_v3 = vadd.f32 1e-05, %v2040_v33 }
 0x5e5   : > { %2969 = vrsqrt.f32 %v2041_v3 }
 0x5e8   : > { %v2251_v21 = vpop.permute.xlu0 %2250 }
 0x5e9   : > { %vm2252_vm7 = vcmp.eq.s32.totalorder %v2251_v21, 1 }
 0x5f2   : > { %v2970_v8 = vpop.eup %2969 }
 0x5f3   : > { %v2043_v56 = vmul.f32 %v2970_v8, %v2035_v28 }
 0x5f5   : > { %v2048_v15 = vmul.f32 %v2515_v34, %v2043_v56  ;;  %v2977_v56 = vld [vmem:[%s3387_s22] sm:$0xff]  ;;  %s3116_s22 = scalar_lea.vmem %s3115_s10, 512 }
 0x5f6   : > { %p3118_p2 = scmp.lt.s32.totalorder %s3116_s22, %s3110_s9 }
 0x5f7   : > { %v2053_v36 = vadd.f32 %v2516_v35, %v2048_v15 }
 0x5f8   : > { %p3119_p9 = por %p3118_p2, %p3117_p12 }
 0x5f9   : > { %2822 = vmatmul.mubr.msk.f32.vlgmr.msra.gmra.mxu1 %vm2029_vm1, %v2053_v36 }
 0x5fa   : > { %2825 = vmatpush3.msra.mxu1 %v2066_v37  ;;  %2840 = vmatprep.mubr.msk.f32.mxu1 %vm3196_vm0, %v3195_v0  ;;  %p3120_p11 = pnand %p3119_p9, %p3113_p0 }
 0x5fb   : > { %2826 = vmatprep.subr.mxu1 %v3195_v0 }
 0x5fc   : > { %2827 = vmatpush3.msra.mxu1 %v2065_v38 }
 0x5fd   : > { %2828 = vmatprep.subr.mxu1 %v3195_v0 }
 0x5fe   : > { %2829 = vmatpush3.msra.mxu1 %v2064_v39 }
 0x5ff   : > { %2830 = vmatprep.subr.mxu1 %v3195_v0 }
 0x600   : > { %2831 = vmatpush3.msra.mxu1 %v2063_v40 }
 0x601   : > { %2832 = vmatprep.subr.mxu1 %v3195_v0 }
 0x602   : > { %2833 = vmatpush3.msra.mxu1 %v2062_v41 }
 0x603   : > { %2834 = vmatprep.subr.mxu1 %v3195_v0 }
 0x604   : > { %2835 = vmatpush3.msra.mxu1 %v2061_v13 }
 0x605   : > { %2836 = vmatprep.subr.mxu1 %v3195_v0 }
 0x606   : > { %2837 = vmatpush3.msra.mxu1 %v2060_v42 }
 0x607   : > { %2838 = vmatprep.subr.mxu1 %v3195_v0 }
 0x608   : > { %2839 = vmatpush3.msra.mxu1 %v2059_v43 }
 0x609   : > { %2843 = vmatprep.subr.mxu1 %v3195_v0 }
 0x6b9   : > { %v2140_v45 = vpop.f32.mrf.mxu1 }
 0x6ba   : > { %v2141_v46 = vadd.f32 %v2517_v44, %v2140_v45 }
 0x6bb   : > { %v2823_v47 = vpop.f32.mrf.mxu1 }
 0x6bc   : > { %v2144_v48 = vmax.f32 %v2141_v46, 0.0 }
 0x6be   : > { %2841 = vmatmul.mubr.msk.f32.vlgmr.msra.gmra.mxu1 %vm2149_vm2, %v2144_v48 }
 0x6bf   : > { %2851 = vmatprep.mubr.msk.f32.mxu1 %vm3196_vm0, %v3195_v0  ;;  %2844 = vmatpush3.msra.mxu1 %v2268_v7 }
 0x6c0   : > { %2845 = vmatprep.subr.mxu1 %v3195_v0 }
 0x6c1   : > { %2846 = vmatpush3.msra.mxu1 %v2267_v9 }
 0x6c2   : > { %2847 = vmatprep.subr.mxu1 %v3195_v0 }
 0x6c3   : > { %2848 = vmatpush3.msra.mxu1 %v2266_v10 }
 0x6c4   : > { %2849 = vmatprep.subr.mxu1 %v3195_v0 }
 0x6c5   : > { %2850 = vmatpush3.msra.mxu1 %v2265_v11 }
 0x77e   : > { %v2219_v50 = vpop.f32.mrf.mxu1 }
 0x77f   : > { %v2220_v51 = vadd.f32 %v2519_v49, %v2219_v50 }
 0x780   : > { %v2842_v52 = vpop.f32.mrf.mxu1 }
 0x781   : > { %v2223_v53 = vadd.f32 %v2220_v51, %v2053_v36 }
 0x783   : > { %v2224_v54 = vsel %vm2029_vm1, %v2223_v53, 0.0 }
 0x784   : > { %2225 = vadd.xlane.f32.xlu1 %v2224_v54 }
 0x80d   : > { %v2226_v60 = vpop.xlane.xlu1 %2225 }
 0x80e   : > { %v2227_v61 = vmul.f32 0.03125, %v2226_v60 }
 0x810   : > { %v2228_v62 = vsub.f32 %v2223_v53, %v2227_v61 }
 0x812   : > { %v2229_v63 = vmul.f32 %v2228_v62, %v2228_v62 }
 0x814   : > { %v2230_v1 = vsel %vm2029_vm1, %v2229_v63, 0.0 }
 0x815   : > { %2231 = vadd.xlane.f32.xlu1 %v2230_v1 }
 0x826   : > { %2256 = vrot.lane.b32.xlu1 %v2255_v4, %s3200_s25 }
 0x89e   : > { %v2232_v12 = vpop.xlane.xlu1 %2231 }
 0x89f   : > { %v2233_v14 = vmul.f32 0.03125, %v2232_v12 }
 0x8a1   : > { %v2234_v16 = vadd.f32 1e-05, %v2233_v14 }
 0x8a2   : > { %v2257_v17 = vpop.permute.xlu1 %2256 }
 0x8a3   : > { %2971 = vrsqrt.f32 %v2234_v16  ;;  %vm2258_vm5 = vcmp.ne.s32.totalorder %v2257_v17, 0 }
 0x8a4   : > { %vm3536_vm6 = vmand %vm2247_vm3, %vm2258_vm5 }
 0x8a5   : > { %v2348_v19 = vsel %vm3536_vm6, 1, %v3198_v58  ;;  %v2263_v2 = vsel %vm3536_vm6, 3.0, %v2262_v32 }
 0x8a6   : > { %2350 = vperm.xlu1 %2957, %v2348_v19  }
 0x8aa   : > { %2355 = vrot.lane.b32.xlu1 %v2976_v55, %s3201_s13 }
 0x8b0   : > { %v2972_v0 = vpop.eup %2971 }
 0x8b1   : > { %v2236_v23 = vmul.f32 %v2972_v0, %v2228_v62 }
 0x8b3   : > { %v2241_v26 = vmul.f32 %v2521_v20, %v2236_v23 }
 0x8b5   : > { %v2246_v27 = vadd.f32 %v2522_v24, %v2241_v26 }
 0x8b7   : > { %v2253_v28 = vsel %vm2252_vm7, %v2246_v27, %v3506_v22  ;;  %v2524_v22 = vld [vmem:[#allocation10 + $0x7] ss:$0 sm:$0xff] }
 0x8b8   : > { %2852 = vmatmul.mubr.msk.f32.vlgmr.msra.gmra.mxu1 %vm2029_vm1, %v2253_v28 }
 0x921   : > { %v2351_v25 = vpop.permute.xlu1 %2350 }
 0x922   : > { %vm2352_vm9 = vcmp.eq.s32.totalorder %v2351_v25, 1 }
 0x925   : > { %v2356_v30 = vpop.permute.xlu1 %2355 }
 0x926   : > { %v2358_v31 = vsel %vm2352_vm9, %v2976_v55, %v2356_v30 }
 0x927   : > { %2360 = vrot.lane.b32.xlu1 %v2358_v31, %s3202_s27 }
 0x92b   : > { %2364 = vrot.lane.b32.xlu1 %v2263_v2, %s3203_s6 }
 0x978   : > { %v2343_v33 = vpop.f32.mrf.mxu1 }
 0x979   : > { %v2344_v3 = vadd.f32 %v2524_v22, %v2343_v33 }
 0x97a   : > { %v2853_v8 = vpop.f32.mrf.mxu1 }
 0x97b   : > { %v2347_v34 = vadd.f32 %v2344_v3, %v300_v6 }
 0x97d   : > { %v2353_v35 = vsel %vm2352_vm9, %v2347_v34, %v2977_v56 }
 0x97e   : > { %2372 = vst [vmem:[%s296_s8] sm:$0xff] %v2353_v35 }
 0x999   : > { %v2361_v15 = vpop.permute.xlu1 %2360 }
 0x99a   : > { %v2367_v36 = vsel %vm2029_vm1, %v2253_v28, %v2361_v15 }
 0x99d   : > { %v2365_v37 = vpop.permute.xlu1 %2364 }
 0x99e   : > { %v2369_v38 = vsel %vm2368_vm10, %v2367_v36, %v2365_v37 }
 0x99f   : > { %v2371_v39 = vsel %vm2370_vm11, %v2369_v38, 0.0 }
 0x9a0   : > { %2373 = vst [vmem:[%s296_s8 + $0x8] sm:$0xff] %v2371_v39 }
 0x9a1   : > { %3123 = shalt.err (!%p3120_p11)
}
 0x9a2   : > { %s3124_s25 = scalar_lea.hbm %s3556_s26, 256  ;;  %s3128_s27 = scalar_lea.hbm %s3598_s5, 512 }
 0x9a3   : > { %p3125_p13 = scmp.ne.s32.totalorder %s3556_s26, %s3124_s25  ;;  %p3129_p4 = scmp.lt.s32.totalorder %s3556_s26, %s3598_s5 }
 0x9a4   : > { %p3130_p6 = scmp.lt.s32.totalorder %s3128_s27, %s3124_s25 }
 0x9a5   : > { %p3126_p1 = pnand %p3125_p13, %p3618_p7 }
 0x9a6   : > { %p3131_p5 = por %p3130_p6, %p3129_p4 }
 0x9a7   : > { %p3127_p3 = pneg %p3126_p1 }
 0x9a9   : > { %p3132_p8 = pnand %p3131_p5, %p3127_p3 }
 0x9ab   : > { %3135 = shalt.err (!%p3132_p8)
}
 0x9ac   : > { %2872 = dma.vmem_to_hbm [thread:$0]  (%p3618_p7), %s2390_s23, 256, %s3556_s26, %s2375_s29  }
 0x9ad PF: > { %s2401_s8 = sand.u32 1, %s3170_s18   ;;  %p3619_p10 = scmp.ne.s32.totalorder %s3608_s16, 0 }
 0x9ae   : > { %p3620_p0 = scmp.ge.s32.totalorder %s3182_s21, 2  ;;  %s2402_s17 = scalar_lea.sflag [#allocation4], %s2401_s8 }
 0x9b0   : > { %p2892_p12 = pnand %p3620_p0, %p3619_p10 }
 0x9b2   : > { %p2893_p2 = pneg %p2892_p12 }
 0x9b4   : > { %3165 = dma.done.wait (%p2893_p2), %s2402_s17, 256  }
 0x9b5   : > { %3167 = vsyncadd (%p2893_p2), %s2402_s17, 4294967040  ;;  %p20_p9 = scmp.ge.s32.totalorder %s3320_s28, 4   ;;  %s3621_s18 = smov %s3174_s19 }
 0x9b6   : > { %s3622_s19 = smov %s3178_s20  ;;  %s3623_s20 = smov %s3331_s11 }
 0x9b7   : > { %s3624_s21 = smov %s3320_s28  ;;  %22 = sbr.rel (!%p20_p9) target bundleno = 7 (0x7), region = 103 }
 0x9bc   :  { %2407 = vsyncpa [#allocation3], 1 }
 0x9bd   :  { %2409 = vsyncpa [#allocation3 + $0x1], 1 }
 0x9be   :  { %2410 = vsyncpa [#allocation6], 1 }
 0x9bf   :  { %2411 = vsyncpa [#allocation9], 1 }
 0x9c0   :  { %2412 = vsyncpa [#allocation4], 1 }
 0x9c1   :  { %2414 = vsyncpa [#allocation4 + $0x1], 1 }

</bundles_post_ra>
